<compile_context>
chip_gen: v6e
topology: v6e:2x2x1
jax: 0.10.0
libtpu: 0.0.40
codegen_flags: <defaults>
</compile_context>

<pallas_src>
import numpy as np
import jax
import jax.numpy as jnp
from jax import lax
from jax.experimental import pallas as pl
from jax.experimental.pallas import tpu as pltpu

BN_EPS = 1e-5
# MXU operand dtype. jnp.bfloat16 roughly doubles MXU throughput on v6e/v7x at
# a small numerics cost; float32 is kept for parity with the PyTorch reference.
MXU_DTYPE = jnp.float32


def _vmem():
    return pl.BlockSpec(memory_space=pltpu.MemorySpace.VMEM)


# ----------------------------------------------------------------------------
# Static geometry of one padded / channel-major / flattened resolution
# ----------------------------------------------------------------------------

class _Geom:
    def __init__(self, n, h, w):
        self.N, self.H, self.W = n, h, w
        self.Hp, self.Wp = h + 2, w + 2
        self.Mp = n * self.Hp * self.Wp      # padded-flat length (lane axis)
        self.M = n * h * w                   # number of valid positions
        # 3x3 / pad=1 tap offsets in padded-flat coordinates.
        self.offsets = [(dy - 1) * self.Wp + (dx - 1)
                        for dy in range(3) for dx in range(3)]
        # Wide scratch: data sits at a 128-aligned base with zero margins on
        # both sides so every tap is an in-bounds static slice.
        self.base = ((self.Wp + 1 + 127) // 128) * 128
        self.wide = self.base + self.Mp + self.Wp + 1

    def idx(self, n, y, x):
        return n * self.Hp * self.Wp + (y + 1) * self.Wp + (x + 1)

    def mask_np(self):
        m = np.zeros((1, self.Mp), np.float32)
        for n in range(self.N):
            for y in range(self.H):
                s = self.idx(n, y, 0)
                m[0, s:s + self.W] = 1.0
        return m


# ----------------------------------------------------------------------------
# In-kernel helpers (traced inside the Pallas kernels)
# ----------------------------------------------------------------------------

def _conv3x3_all(src, xwide_ref, slab_ref, w_all, geom):
    """3x3 / pad=1 / stride=1 conv evaluated at every padded-flat position.

    src:   (Cin, Mp) value whose padding ring is zero.
    w_all: (Cout, 9*Cin) value (tap-major, channel-minor rows).
    Returns (Cout, Mp) float32; values at ring positions are don't-care.
    """
    cin = src.shape[0]
    xwide_ref[...] = jnp.zeros_like(xwide_ref)
    xwide_ref[:, geom.base:geom.base + geom.Mp] = src.astype(xwide_ref.dtype)
    for t, off in enumerate(geom.offsets):          # build (9*Cin, Mp) tap slab
        s = geom.base + off
        slab_ref[t * cin:(t + 1) * cin, :] = xwide_ref[:, s:s + geom.Mp]
    # single MXU matmul, K = 9*Cin
    return jnp.dot(w_all.astype(MXU_DTYPE), slab_ref[...],
                   preferred_element_type=jnp.float32)


def _batchnorm(acc, mask, m_valid, gamma, beta):
    """Training-mode BatchNorm over the valid positions (mask == 1)."""
    inv_m = 1.0 / float(m_valid)
    mean = jnp.sum(acc * mask, axis=-1, keepdims=True) * inv_m
    cent = (acc - mean) * mask                       # two-pass centered variance
    var = jnp.sum(cent * cent, axis=-1, keepdims=True) * inv_m
    scale = gamma * lax.rsqrt(var + BN_EPS)          # fold gamma into the scale
    shift = beta - mean * scale
    return acc * scale + shift


# ----------------------------------------------------------------------------
# Kernel builders
# ----------------------------------------------------------------------------

def _make_branch_kernel(num_blocks, geom):
    """All BasicBlocks of one branch fused into a single kernel.

    Ref order: x, (w1,g1,b1,w2,g2,b2)*num_blocks, mask, out, xwide, slab.
    """
    def kernel(*refs):
        x_ref = refs[0]
        prm = refs[1:1 + 6 * num_blocks]
        mask = refs[1 + 6 * num_blocks][...]
        o_ref = refs[2 + 6 * num_blocks]
        xwide_ref, slab_ref = refs[3 + 6 * num_blocks:]

        x = x_ref[...].astype(jnp.float32)
        for b in range(num_blocks):
            w1, g1, b1, w2, g2, b2 = (r[...] for r in prm[6 * b:6 * b + 6])
            a1 = _conv3x3_all(x, xwide_ref, slab_ref, w1, geom)
            y1 = jnp.maximum(_batchnorm(a1, mask, geom.M, g1, b1), 0.0) * mask
            a2 = _conv3x3_all(y1, xwide_ref, slab_ref, w2, geom)
            y2 = _batchnorm(a2, mask, geom.M, g2, b2) + x        # residual
            x = jnp.maximum(y2, 0.0) * mask
        o_ref[...] = x.astype(o_ref.dtype)

    return kernel


def _make_fuse_kernel(i, num_branches, geoms):
    """One kernel per output scale: all fuse terms + sum + final ReLU."""
    n_params = 0
    for j in range(num_branches):
        if j > i:
            n_params += 4                    # w1x1, gamma, beta, U
        elif j < i:
            n_params += 4 * (i - j)          # per step: w_all, gamma, beta, D
    n_in = 2 * num_branches + n_params

    def kernel(*refs):
        in_refs = refs[:n_in]
        o_ref = refs[n_in]
        scratch = refs[n_in + 1:]

        xs = in_refs[:num_branches]
        masks = [in_refs[num_branches + j][...] for j in range(num_branches)]
        idx = 2 * num_branches
        sidx = 0

        acc = xs[i][...].astype(jnp.float32)                 # j == i term
        for j in range(num_branches):
            if j == i:
                continue
            if j > i:
                w, g, b, u = (in_refs[idx + q][...] for q in range(4))
                idx += 4
                # 1x1 conv + BN at branch-j resolution, bilinear upsample to i.
                a = jnp.dot(w.astype(MXU_DTYPE), xs[j][...].astype(MXU_DTYPE),
                            preferred_element_type=jnp.float32)
                t = _batchnorm(a, masks[j], geoms[j].M, g, b) * masks[j]
                acc = acc + jnp.dot(t.astype(MXU_DTYPE), u.astype(MXU_DTYPE),
                                    preferred_element_type=jnp.float32)
            else:
                t = xs[j][...].astype(jnp.float32)
                steps = i - j
                for k in range(steps):
                    w, g, b, d = (in_refs[idx + q][...] for q in range(4))
                    idx += 4
                    xwide_ref, slab_ref = scratch[2 * sidx], scratch[2 * sidx + 1]
                    sidx += 1
                    gin, gout = geoms[j + k], geoms[j + k + 1]
                    # stride-2 conv == stride-1 conv subsampled at even offsets
                    a_full = _conv3x3_all(t, xwide_ref, slab_ref, w, gin)
                    a = jnp.dot(a_full.astype(MXU_DTYPE), d.astype(MXU_DTYPE),
                                preferred_element_type=jnp.float32)
                    y = _batchnorm(a, masks[j + k + 1], gout.M, g, b)
                    if k < steps - 1:
                        y = jnp.maximum(y, 0.0)
                    t = y * masks[j + k + 1]
                acc = acc + t
        o_ref[...] = (jnp.maximum(acc, 0.0) * masks[i]).astype(o_ref.dtype)

    return kernel, n_in


# ----------------------------------------------------------------------------
# Host-built mapping matrices / layout glue
# ----------------------------------------------------------------------------

def _interp_matrix_1d(out_size, in_size):
    """PyTorch F.interpolate bilinear weights, align_corners=False, 1-D."""
    a = np.zeros((out_size, in_size), np.float32)
    scale = in_size / out_size
    for d in range(out_size):
        src = max((d + 0.5) * scale - 0.5, 0.0)
        i0 = min(int(np.floor(src)), in_size - 1)
        lam = src - i0
        i1 = min(i0 + 1, in_size - 1)
        a[d, i0] += 1.0 - lam
        a[d, i1] += lam
    return a


def _upsample_matrix(g_src, g_dst):
    """(Mp_src, Mp_dst): padded-flat -> bilinear upsample -> padded-flat."""
    # TODO(synk): for production HRNet resolutions use the separable Ah/Aw form
    # (two small matmuls) instead of this combined dense map.
    ah = _interp_matrix_1d(g_dst.H, g_src.H)
    aw = _interp_matrix_1d(g_dst.W, g_src.W)
    u = np.zeros((g_src.Mp, g_dst.Mp), np.float32)
    for n in range(g_src.N):
        for yo in range(g_dst.H):
            ys = np.nonzero(ah[yo])[0]
            for xo in range(g_dst.W):
                mo = g_dst.idx(n, yo, xo)
                for yi in ys:
                    for xi in np.nonzero(aw[xo])[0]:
                        u[g_src.idx(n, yi, xi), mo] += ah[yo, yi] * aw[xo, xi]
    return jnp.asarray(u)


def _downsample_matrix(g_src, g_dst):
    """(Mp_src, Mp_dst) 0/1 map selecting the stride-2 sample positions."""
    d = np.zeros((g_src.Mp, g_dst.Mp), np.float32)
    for n in range(g_src.N):
        for yo in range(g_dst.H):
            for xo in range(g_dst.W):
                d[g_src.idx(n, 2 * yo, 2 * xo), g_dst.idx(n, yo, xo)] = 1.0
    return jnp.asarray(d)


def _prep_w3(w):
    """(3,3,Cin,Cout) -> (Cout, 9*Cin), tap-major / channel-minor rows."""
    kh, kw, cin, cout = w.shape
    return jnp.transpose(w, (3, 0, 1, 2)).reshape(cout, kh * kw * cin)


def _to_flat(x):
    """NCHW -> channel-major padded-flat (C, N*Hp*Wp) with a zero ring."""
    n, c, h, w = x.shape
    xp = jnp.pad(x, ((0, 0), (0, 0), (1, 1), (1, 1)))
    return jnp.transpose(xp, (1, 0, 2, 3)).reshape(c, n * (h + 2) * (w + 2))


def _to_nchw(xf, geom):
    c = xf.shape[0]
    x = xf.reshape(c, geom.N, geom.Hp, geom.Wp)
    return jnp.transpose(x, (1, 0, 2, 3))[:, :, 1:geom.H + 1, 1:geom.W + 1]


# ----------------------------------------------------------------------------
# HighResolutionModule forward (Pallas)
# ----------------------------------------------------------------------------

def hrmodule_forward(xs_nchw, params, num_branches, multi_scale_output=True):
    n = xs_nchw[0].shape[0]
    channels = [x.shape[1] for x in xs_nchw]
    geoms = [_Geom(n, x.shape[2], x.shape[3]) for x in xs_nchw]
    masks = [jnp.asarray(g.mask_np()) for g in geoms]
    xf = [_to_flat(x) for x in xs_nchw]

    # --- branches: all BasicBlocks of a branch fused into one pallas_call ---
    for bi in range(num_branches):
        blocks = params['branches'][bi]
        c, g = channels[bi], geoms[bi]
        args = [xf[bi]]
        for blk in blocks:
            args += [_prep_w3(blk['w1']), blk['g1'].reshape(c, 1),
                     blk['b1'].reshape(c, 1),
                     _prep_w3(blk['w2']), blk['g2'].reshape(c, 1),
                     blk['b2'].reshape(c, 1)]
        args.append(masks[bi])
        xf[bi] = pl.pallas_call(
            _make_branch_kernel(len(blocks), g),
            out_shape=jax.ShapeDtypeStruct((c, g.Mp), jnp.float32),
            in_specs=[_vmem()] * len(args),
            out_specs=_vmem(),
            scratch_shapes=[pltpu.VMEM((c, g.wide), MXU_DTYPE),
                            pltpu.VMEM((9 * c, g.Mp), MXU_DTYPE)],
        )(*args)

    if num_branches == 1:
        return [_to_nchw(xf[0], geoms[0])]

    # --- fuse layers: one pallas_call per output scale -----------------------
    outs = []
    for i in range(num_branches if multi_scale_output else 1):
        args = list(xf) + list(masks)
        scratch = []
        for j in range(num_branches):
            if j == i:
                continue
            p = params['fuse'][i][j]
            if j > i:
                ci = channels[i]
                args += [p['w'][0, 0].T, p['g'].reshape(ci, 1),
                         p['b'].reshape(ci, 1),
                         _upsample_matrix(geoms[j], geoms[i])]
            else:
                for k, pk in enumerate(p):
                    gin, gout = geoms[j + k], geoms[j + k + 1]
                    assert (gin.H - 1) // 2 + 1 == gout.H
                    assert (gin.W - 1) // 2 + 1 == gout.W
                    cout = pk['w'].shape[-1]
                    args += [_prep_w3(pk['w']), pk['g'].reshape(cout, 1),
                             pk['b'].reshape(cout, 1),
                             _downsample_matrix(gin, gout)]
                    scratch += [pltpu.VMEM((channels[j], gin.wide), MXU_DTYPE),
                                pltpu.VMEM((9 * channels[j], gin.Mp), MXU_DTYPE)]
        kernel, n_in = _make_fuse_kernel(i, num_branches, geoms)
        assert n_in == len(args)
        o = pl.pallas_call(
            kernel,
            out_shape=jax.ShapeDtypeStruct((channels[i], geoms[i].Mp), jnp.float32),
            in_specs=[_vmem()] * len(args),
            out_specs=_vmem(),
            scratch_shapes=scratch,
        )(*args)
        outs.append(_to_nchw(o, geoms[i]))
    return outs


# ----------------------------------------------------------------------------
# Pure-JAX reference (for a numerical sanity check)
# ----------------------------------------------------------------------------

def _ref_conv_bn(x, w, gamma, beta, stride, padding, relu):
    y = lax.conv_general_dilated(
        x, w, window_strides=(stride, stride),
        padding=[(padding, padding), (padding, padding)],
        dimension_numbers=('NCHW', 'HWIO', 'NCHW'),
        precision=lax.Precision.HIGHEST)
    mean = jnp.mean(y, axis=(0, 2, 3), keepdims=True)
    var = jnp.mean((y - mean) ** 2, axis=(0, 2, 3), keepdims=True)
    y = (y - mean) * lax.rsqrt(var + BN_EPS)
    y = y * gamma.reshape(1, -1, 1, 1) + beta.reshape(1, -1, 1, 1)
    return jnp.maximum(y, 0.0) if relu else y


def _ref_upsample(x, ho, wo):
    ah = jnp.asarray(_interp_matrix_1d(ho, x.shape[2]))
    aw = jnp.asarray(_interp_matrix_1d(wo, x.shape[3]))
    return jnp.einsum('hy,wx,ncyx->nchw', ah, aw, x)


def hrmodule_reference(xs, params, num_branches, multi_scale_output=True):
    xs = list(xs)
    for i in range(num_branches):
        for blk in params['branches'][i]:
            res = xs[i]
            y = _ref_conv_bn(xs[i], blk['w1'], blk['g1'], blk['b1'], 1, 1, True)
            y = _ref_conv_bn(y, blk['w2'], blk['g2'], blk['b2'], 1, 1, False)
            xs[i] = jnp.maximum(y + res, 0.0)
    if num_branches == 1:
        return [xs[0]]
    outs = []
    for i in range(num_branches if multi_scale_output else 1):
        acc = None
        for j in range(num_branches):
            if j == i:
                t = xs[j]
            elif j > i:
                p = params['fuse'][i][j]
                t = _ref_conv_bn(xs[j], p['w'], p['g'], p['b'], 1, 0, False)
                t = _ref_upsample(t, xs[i].shape[2], xs[i].shape[3])
            else:
                t = xs[j]
                chain = params['fuse'][i][j]
                for k, pk in enumerate(chain):
                    t = _ref_conv_bn(t, pk['w'], pk['g'], pk['b'], 2, 1,
                                     k < len(chain) - 1)
            acc = t if acc is None else acc + t
        outs.append(jnp.maximum(acc, 0.0))
    return outs


# ----------------------------------------------------------------------------
# Deterministic parameter initialization (shapes follow the PyTorch __init__)
# ----------------------------------------------------------------------------

def init_params(key, num_branches, num_blocks, num_inchannels, num_channels,
                multi_scale_output=True):
    expansion = 1  # BasicBlock
    assert all(ic == c * expansion for ic, c in zip(num_inchannels, num_channels)), \
        "demo config assumes no downsample path inside branches"

    keys = iter(jax.random.split(key, 1024))

    def conv_w(kh, kw, cin, cout):
        return (jax.random.normal(next(keys), (kh, kw, cin, cout), jnp.float32)
                / np.sqrt(kh * kw * cin))

    def bn_p(c):
        g = 1.0 + 0.1 * jax.random.normal(next(keys), (c,), jnp.float32)
        b = 0.1 * jax.random.normal(next(keys), (c,), jnp.float32)
        return g, b

    params = {'branches': [], 'fuse': []}
    for i in range(num_branches):
        blocks = []
        cin = num_inchannels[i]
        c = num_channels[i]
        for _ in range(num_blocks[i]):
            g1, b1 = bn_p(c)
            g2, b2 = bn_p(c)
            blocks.append(dict(w1=conv_w(3, 3, cin, c), g1=g1, b1=b1,
                               w2=conv_w(3, 3, c, c), g2=g2, b2=b2))
            cin = c
        params['branches'].append(blocks)

    if num_branches > 1:
        n_fuse = num_branches if multi_scale_output else 1
        for i in range(n_fuse):
            row = []
            for j in range(num_branches):
                if j == i:
                    row.append(None)
                elif j > i:
                    g, b = bn_p(num_inchannels[i])
                    row.append(dict(w=conv_w(1, 1, num_inchannels[j], num_inchannels[i]),
                                    g=g, b=b))
                else:
                    chain = []
                    for k in range(i - j):
                        cout = num_inchannels[i] if k == i - j - 1 else num_inchannels[j]
                        g, b = bn_p(cout)
                        chain.append(dict(w=conv_w(3, 3, num_inchannels[j], cout),
                                          g=g, b=b))
                    row.append(chain)
            params['fuse'].append(row)
    return params


# ----------------------------------------------------------------------------
if __name__ == "__main__":
    num_branches = 2
    num_blocks = [1, 1]
    num_inchannels = [8, 16]
    num_channels = [8, 16]
    multi_scale_output = True
    B, H, W = 2, 16, 16

    key = jax.random.PRNGKey(0)
    k0, k1, kp = jax.random.split(key, 3)
    # x is a list of per-branch feature maps (NCHW like PyTorch)
    x0 = jax.random.normal(k0, (B, num_inchannels[0], H, W), jnp.float32)
    x1 = jax.random.normal(k1, (B, num_inchannels[1], H // 2, W // 2), jnp.float32)

    params = init_params(kp, num_branches, num_blocks, num_inchannels,
                         num_channels, multi_scale_output)

    outs = hrmodule_forward([x0, x1], params, num_branches, multi_scale_output)
    outs = jax.block_until_ready(outs)

    assert outs[0].shape == (B, num_inchannels[0], H, W)
    assert outs[1].shape == (B, num_inchannels[1], H // 2, W // 2)
    assert all(bool(jnp.all(jnp.isfinite(o))) for o in outs)
    assert all(bool(jnp.all(o >= 0)) for o in outs)  # final ReLU

    # numerical sanity check against a pure-JAX reference of the same module
    refs = hrmodule_reference([x0, x1], params, num_branches, multi_scale_output)
    for o, r in zip(outs, refs):
        np.testing.assert_allclose(np.asarray(o), np.asarray(r),
                                   rtol=2e-2, atol=2e-2)

    print("KERNEL_OK")
</pallas_src>

<mosaic_0001>
module attributes {stable_mosaic.version = 11 : i64} {
  func.func @kernel(%arg0: memref<8x648xf32, #tpu.memory_space<vmem>>, %arg1: memref<8x72xf32, #tpu.memory_space<vmem>>, %arg2: memref<8x1xf32, #tpu.memory_space<vmem>>, %arg3: memref<8x1xf32, #tpu.memory_space<vmem>>, %arg4: memref<8x72xf32, #tpu.memory_space<vmem>>, %arg5: memref<8x1xf32, #tpu.memory_space<vmem>>, %arg6: memref<8x1xf32, #tpu.memory_space<vmem>>, %arg7: memref<1x648xf32, #tpu.memory_space<vmem>>, %arg8: memref<8x648xf32, #tpu.memory_space<vmem>>, %arg9: memref<8x795xf32, #tpu.memory_space<vmem>>, %arg10: memref<72x648xf32, #tpu.memory_space<vmem>>) attributes {dimension_semantics = [], scalar_prefetch = 0 : i64, scratch_operands = 2 : i64, tpu.core_type = #tpu.core_type<tc>} {
    %c0 = arith.constant 0 : index
    %c0_0 = arith.constant 0 : index
    %0 = vector.load %arg7[%c0, %c0_0] : memref<1x648xf32, #tpu.memory_space<vmem>>, vector<1x648xf32>
    %c0_1 = arith.constant 0 : index
    %c0_2 = arith.constant 0 : index
    %1 = vector.load %arg0[%c0_1, %c0_2] : memref<8x648xf32, #tpu.memory_space<vmem>>, vector<8x648xf32>
    %c0_3 = arith.constant 0 : index
    %c0_4 = arith.constant 0 : index
    %2 = vector.load %arg1[%c0_3, %c0_4] : memref<8x72xf32, #tpu.memory_space<vmem>>, vector<8x72xf32>
    %c0_5 = arith.constant 0 : index
    %c0_6 = arith.constant 0 : index
    %3 = vector.load %arg2[%c0_5, %c0_6] : memref<8x1xf32, #tpu.memory_space<vmem>>, vector<8x1xf32>
    %c0_7 = arith.constant 0 : index
    %c0_8 = arith.constant 0 : index
    %4 = vector.load %arg3[%c0_7, %c0_8] : memref<8x1xf32, #tpu.memory_space<vmem>>, vector<8x1xf32>
    %c0_9 = arith.constant 0 : index
    %c0_10 = arith.constant 0 : index
    %5 = vector.load %arg4[%c0_9, %c0_10] : memref<8x72xf32, #tpu.memory_space<vmem>>, vector<8x72xf32>
    %c0_11 = arith.constant 0 : index
    %c0_12 = arith.constant 0 : index
    %6 = vector.load %arg5[%c0_11, %c0_12] : memref<8x1xf32, #tpu.memory_space<vmem>>, vector<8x1xf32>
    %c0_13 = arith.constant 0 : index
    %c0_14 = arith.constant 0 : index
    %7 = vector.load %arg6[%c0_13, %c0_14] : memref<8x1xf32, #tpu.memory_space<vmem>>, vector<8x1xf32>
    %cst = arith.constant 0.000000e+00 : f32
    %8 = vector.broadcast %cst : f32 to vector<8x795xf32>
    %c0_15 = arith.constant 0 : index
    %c0_16 = arith.constant 0 : index
    %9 = vector.load %arg9[%c0_15, %c0_16] : memref<8x795xf32, #tpu.memory_space<vmem>>, vector<8x795xf32>
    tpu.vector_store %arg9[%c0_15, %c0_16], %8 {strides = array<i32>} : memref<8x795xf32, #tpu.memory_space<vmem>>, vector<8x795xf32>,
    %c0_17 = arith.constant 0 : index
    %c128 = arith.constant 128 : index
    %10 = vector.load %arg9[%c0_17, %c128] : memref<8x795xf32, #tpu.memory_space<vmem>>, vector<8x648xf32>
    tpu.vector_store %arg9[%c0_17, %c128], %1 {strides = array<i32>} : memref<8x795xf32, #tpu.memory_space<vmem>>, vector<8x648xf32>,
    %c0_18 = arith.constant 0 : index
    %c109 = arith.constant 109 : index
    %11 = vector.load %arg9[%c0_18, %c109] : memref<8x795xf32, #tpu.memory_space<vmem>>, vector<8x648xf32>
    %c0_19 = arith.constant 0 : index
    %c0_20 = arith.constant 0 : index
    %12 = vector.load %arg10[%c0_19, %c0_20] : memref<72x648xf32, #tpu.memory_space<vmem>>, vector<8x648xf32>
    tpu.vector_store %arg10[%c0_19, %c0_20], %11 {strides = array<i32>} : memref<72x648xf32, #tpu.memory_space<vmem>>, vector<8x648xf32>,
    %c0_21 = arith.constant 0 : index
    %c110 = arith.constant 110 : index
    %13 = vector.load %arg9[%c0_21, %c110] : memref<8x795xf32, #tpu.memory_space<vmem>>, vector<8x648xf32>
    %c8 = arith.constant 8 : index
    %c0_22 = arith.constant 0 : index
    %14 = vector.load %arg10[%c8, %c0_22] : memref<72x648xf32, #tpu.memory_space<vmem>>, vector<8x648xf32>
    tpu.vector_store %arg10[%c8, %c0_22], %13 {strides = array<i32>} : memref<72x648xf32, #tpu.memory_space<vmem>>, vector<8x648xf32>,
    %c0_23 = arith.constant 0 : index
    %c111 = arith.constant 111 : index
    %15 = vector.load %arg9[%c0_23, %c111] : memref<8x795xf32, #tpu.memory_space<vmem>>, vector<8x648xf32>
    %c16 = arith.constant 16 : index
    %c0_24 = arith.constant 0 : index
    %16 = vector.load %arg10[%c16, %c0_24] : memref<72x648xf32, #tpu.memory_space<vmem>>, vector<8x648xf32>
    tpu.vector_store %arg10[%c16, %c0_24], %15 {strides = array<i32>} : memref<72x648xf32, #tpu.memory_space<vmem>>, vector<8x648xf32>,
    %c0_25 = arith.constant 0 : index
    %c127 = arith.constant 127 : index
    %17 = vector.load %arg9[%c0_25, %c127] : memref<8x795xf32, #tpu.memory_space<vmem>>, vector<8x648xf32>
    %c24 = arith.constant 24 : index
    %c0_26 = arith.constant 0 : index
    %18 = vector.load %arg10[%c24, %c0_26] : memref<72x648xf32, #tpu.memory_space<vmem>>, vector<8x648xf32>
    tpu.vector_store %arg10[%c24, %c0_26], %17 {strides = array<i32>} : memref<72x648xf32, #tpu.memory_space<vmem>>, vector<8x648xf32>,
    %c0_27 = arith.constant 0 : index
    %c128_28 = arith.constant 128 : index
    %19 = vector.load %arg9[%c0_27, %c128_28] : memref<8x795xf32, #tpu.memory_space<vmem>>, vector<8x648xf32>
    %c32 = arith.constant 32 : index
    %c0_29 = arith.constant 0 : index
    %20 = vector.load %arg10[%c32, %c0_29] : memref<72x648xf32, #tpu.memory_space<vmem>>, vector<8x648xf32>
    tpu.vector_store %arg10[%c32, %c0_29], %19 {strides = array<i32>} : memref<72x648xf32, #tpu.memory_space<vmem>>, vector<8x648xf32>,
    %c0_30 = arith.constant 0 : index
    %c129 = arith.constant 129 : index
    %21 = vector.load %arg9[%c0_30, %c129] : memref<8x795xf32, #tpu.memory_space<vmem>>, vector<8x648xf32>
    %c40 = arith.constant 40 : index
    %c0_31 = arith.constant 0 : index
    %22 = vector.load %arg10[%c40, %c0_31] : memref<72x648xf32, #tpu.memory_space<vmem>>, vector<8x648xf32>
    tpu.vector_store %arg10[%c40, %c0_31], %21 {strides = array<i32>} : memref<72x648xf32, #tpu.memory_space<vmem>>, vector<8x648xf32>,
    %c0_32 = arith.constant 0 : index
    %c145 = arith.constant 145 : index
    %23 = vector.load %arg9[%c0_32, %c145] : memref<8x795xf32, #tpu.memory_space<vmem>>, vector<8x648xf32>
    %c48 = arith.constant 48 : index
    %c0_33 = arith.constant 0 : index
    %24 = vector.load %arg10[%c48, %c0_33] : memref<72x648xf32, #tpu.memory_space<vmem>>, vector<8x648xf32>
    tpu.vector_store %arg10[%c48, %c0_33], %23 {strides = array<i32>} : memref<72x648xf32, #tpu.memory_space<vmem>>, vector<8x648xf32>,
    %c0_34 = arith.constant 0 : index
    %c146 = arith.constant 146 : index
    %25 = vector.load %arg9[%c0_34, %c146] : memref<8x795xf32, #tpu.memory_space<vmem>>, vector<8x648xf32>
    %c56 = arith.constant 56 : index
    %c0_35 = arith.constant 0 : index
    %26 = vector.load %arg10[%c56, %c0_35] : memref<72x648xf32, #tpu.memory_space<vmem>>, vector<8x648xf32>
    tpu.vector_store %arg10[%c56, %c0_35], %25 {strides = array<i32>} : memref<72x648xf32, #tpu.memory_space<vmem>>, vector<8x648xf32>,
    %c0_36 = arith.constant 0 : index
    %c147 = arith.constant 147 : index
    %27 = vector.load %arg9[%c0_36, %c147] : memref<8x795xf32, #tpu.memory_space<vmem>>, vector<8x648xf32>
    %c64 = arith.constant 64 : index
    %c0_37 = arith.constant 0 : index
    %28 = vector.load %arg10[%c64, %c0_37] : memref<72x648xf32, #tpu.memory_space<vmem>>, vector<8x648xf32>
    tpu.vector_store %arg10[%c64, %c0_37], %27 {strides = array<i32>} : memref<72x648xf32, #tpu.memory_space<vmem>>, vector<8x648xf32>,
    %c0_38 = arith.constant 0 : index
    %c0_39 = arith.constant 0 : index
    %29 = vector.load %arg10[%c0_38, %c0_39] : memref<72x648xf32, #tpu.memory_space<vmem>>, vector<72x648xf32>
    %cst_40 = arith.constant dense<0.000000e+00> : vector<8x648xf32>
    %30 = tpu.matmul %2, %29, %cst_40 {dimension_numbers = #tpu.dot_dimension_numbers<[1], [0], [0], [1], [0, 0, 1, 1], [], []>} : vector<8x72xf32>, vector<72x648xf32>, vector<8x648xf32> -> vector<8x648xf32>
    %31 = vector.broadcast %0 : vector<1x648xf32> to vector<8x648xf32>
    %32 = arith.mulf %30, %31 : vector<8x648xf32>
    %cst_41 = arith.constant dense<0.000000e+00> : vector<8xf32>
    %33 = vector.multi_reduction <add>, %32, %cst_41 [1] : vector<8x648xf32> to vector<8xf32>
    %34 = vector.shape_cast %33 : vector<8xf32> to vector<8x1xf32>
    %cst_42 = arith.constant 0.001953125 : f32
    %35 = vector.broadcast %cst_42 : f32 to vector<8x1xf32>
    %36 = arith.mulf %34, %35 : vector<8x1xf32>
    %37 = vector.broadcast %36 : vector<8x1xf32> to vector<8x648xf32>
    %38 = arith.subf %30, %37 : vector<8x648xf32>
    %39 = vector.broadcast %0 : vector<1x648xf32> to vector<8x648xf32>
    %40 = arith.mulf %38, %39 : vector<8x648xf32>
    %41 = arith.mulf %40, %40 : vector<8x648xf32>
    %cst_43 = arith.constant dense<0.000000e+00> : vector<8xf32>
    %42 = vector.multi_reduction <add>, %41, %cst_43 [1] : vector<8x648xf32> to vector<8xf32>
    %43 = vector.shape_cast %42 : vector<8xf32> to vector<8x1xf32>
    %cst_44 = arith.constant 0.001953125 : f32
    %44 = vector.broadcast %cst_44 : f32 to vector<8x1xf32>
    %45 = arith.mulf %43, %44 : vector<8x1xf32>
    %cst_45 = arith.constant 9.99999974E-6 : f32
    %46 = vector.broadcast %cst_45 : f32 to vector<8x1xf32>
    %47 = arith.addf %45, %46 : vector<8x1xf32>
    %48 = math.rsqrt %47 : vector<8x1xf32>
    %49 = arith.mulf %3, %48 : vector<8x1xf32>
    %50 = arith.mulf %36, %49 : vector<8x1xf32>
    %51 = arith.subf %4, %50 : vector<8x1xf32>
    %52 = vector.broadcast %49 : vector<8x1xf32> to vector<8x648xf32>
    %53 = arith.mulf %30, %52 : vector<8x648xf32>
    %54 = vector.broadcast %51 : vector<8x1xf32> to vector<8x648xf32>
    %55 = arith.addf %53, %54 : vector<8x648xf32>
    %cst_46 = arith.constant 0.000000e+00 : f32
    %56 = vector.broadcast %cst_46 : f32 to vector<8x648xf32>
    %57 = arith.maximumf %55, %56 : vector<8x648xf32>
    %58 = vector.broadcast %0 : vector<1x648xf32> to vector<8x648xf32>
    %59 = arith.mulf %57, %58 : vector<8x648xf32>
    %cst_47 = arith.constant 0.000000e+00 : f32
    %60 = vector.broadcast %cst_47 : f32 to vector<8x795xf32>
    %c0_48 = arith.constant 0 : index
    %c0_49 = arith.constant 0 : index
    %61 = vector.load %arg9[%c0_48, %c0_49] : memref<8x795xf32, #tpu.memory_space<vmem>>, vector<8x795xf32>
    tpu.vector_store %arg9[%c0_48, %c0_49], %60 {strides = array<i32>} : memref<8x795xf32, #tpu.memory_space<vmem>>, vector<8x795xf32>,
    %c0_50 = arith.constant 0 : index
    %c128_51 = arith.constant 128 : index
    %62 = vector.load %arg9[%c0_50, %c128_51] : memref<8x795xf32, #tpu.memory_space<vmem>>, vector<8x648xf32>
    tpu.vector_store %arg9[%c0_50, %c128_51], %59 {strides = array<i32>} : memref<8x795xf32, #tpu.memory_space<vmem>>, vector<8x648xf32>,
    %c0_52 = arith.constant 0 : index
    %c109_53 = arith.constant 109 : index
    %63 = vector.load %arg9[%c0_52, %c109_53] : memref<8x795xf32, #tpu.memory_space<vmem>>, vector<8x648xf32>
    %c0_54 = arith.constant 0 : index
    %c0_55 = arith.constant 0 : index
    %64 = vector.load %arg10[%c0_54, %c0_55] : memref<72x648xf32, #tpu.memory_space<vmem>>, vector<8x648xf32>
    tpu.vector_store %arg10[%c0_54, %c0_55], %63 {strides = array<i32>} : memref<72x648xf32, #tpu.memory_space<vmem>>, vector<8x648xf32>,
    %c0_56 = arith.constant 0 : index
    %c110_57 = arith.constant 110 : index
    %65 = vector.load %arg9[%c0_56, %c110_57] : memref<8x795xf32, #tpu.memory_space<vmem>>, vector<8x648xf32>
    %c8_58 = arith.constant 8 : index
    %c0_59 = arith.constant 0 : index
    %66 = vector.load %arg10[%c8_58, %c0_59] : memref<72x648xf32, #tpu.memory_space<vmem>>, vector<8x648xf32>
    tpu.vector_store %arg10[%c8_58, %c0_59], %65 {strides = array<i32>} : memref<72x648xf32, #tpu.memory_space<vmem>>, vector<8x648xf32>,
    %c0_60 = arith.constant 0 : index
    %c111_61 = arith.constant 111 : index
    %67 = vector.load %arg9[%c0_60, %c111_61] : memref<8x795xf32, #tpu.memory_space<vmem>>, vector<8x648xf32>
    %c16_62 = arith.constant 16 : index
    %c0_63 = arith.constant 0 : index
    %68 = vector.load %arg10[%c16_62, %c0_63] : memref<72x648xf32, #tpu.memory_space<vmem>>, vector<8x648xf32>
    tpu.vector_store %arg10[%c16_62, %c0_63], %67 {strides = array<i32>} : memref<72x648xf32, #tpu.memory_space<vmem>>, vector<8x648xf32>,
    %c0_64 = arith.constant 0 : index
    %c127_65 = arith.constant 127 : index
    %69 = vector.load %arg9[%c0_64, %c127_65] : memref<8x795xf32, #tpu.memory_space<vmem>>, vector<8x648xf32>
    %c24_66 = arith.constant 24 : index
    %c0_67 = arith.constant 0 : index
    %70 = vector.load %arg10[%c24_66, %c0_67] : memref<72x648xf32, #tpu.memory_space<vmem>>, vector<8x648xf32>
    tpu.vector_store %arg10[%c24_66, %c0_67], %69 {strides = array<i32>} : memref<72x648xf32, #tpu.memory_space<vmem>>, vector<8x648xf32>,
    %c0_68 = arith.constant 0 : index
    %c128_69 = arith.constant 128 : index
    %71 = vector.load %arg9[%c0_68, %c128_69] : memref<8x795xf32, #tpu.memory_space<vmem>>, vector<8x648xf32>
    %c32_70 = arith.constant 32 : index
    %c0_71 = arith.constant 0 : index
    %72 = vector.load %arg10[%c32_70, %c0_71] : memref<72x648xf32, #tpu.memory_space<vmem>>, vector<8x648xf32>
    tpu.vector_store %arg10[%c32_70, %c0_71], %71 {strides = array<i32>} : memref<72x648xf32, #tpu.memory_space<vmem>>, vector<8x648xf32>,
    %c0_72 = arith.constant 0 : index
    %c129_73 = arith.constant 129 : index
    %73 = vector.load %arg9[%c0_72, %c129_73] : memref<8x795xf32, #tpu.memory_space<vmem>>, vector<8x648xf32>
    %c40_74 = arith.constant 40 : index
    %c0_75 = arith.constant 0 : index
    %74 = vector.load %arg10[%c40_74, %c0_75] : memref<72x648xf32, #tpu.memory_space<vmem>>, vector<8x648xf32>
    tpu.vector_store %arg10[%c40_74, %c0_75], %73 {strides = array<i32>} : memref<72x648xf32, #tpu.memory_space<vmem>>, vector<8x648xf32>,
    %c0_76 = arith.constant 0 : index
    %c145_77 = arith.constant 145 : index
    %75 = vector.load %arg9[%c0_76, %c145_77] : memref<8x795xf32, #tpu.memory_space<vmem>>, vector<8x648xf32>
    %c48_78 = arith.constant 48 : index
    %c0_79 = arith.constant 0 : index
    %76 = vector.load %arg10[%c48_78, %c0_79] : memref<72x648xf32, #tpu.memory_space<vmem>>, vector<8x648xf32>
    tpu.vector_store %arg10[%c48_78, %c0_79], %75 {strides = array<i32>} : memref<72x648xf32, #tpu.memory_space<vmem>>, vector<8x648xf32>,
    %c0_80 = arith.constant 0 : index
    %c146_81 = arith.constant 146 : index
    %77 = vector.load %arg9[%c0_80, %c146_81] : memref<8x795xf32, #tpu.memory_space<vmem>>, vector<8x648xf32>
    %c56_82 = arith.constant 56 : index
    %c0_83 = arith.constant 0 : index
    %78 = vector.load %arg10[%c56_82, %c0_83] : memref<72x648xf32, #tpu.memory_space<vmem>>, vector<8x648xf32>
    tpu.vector_store %arg10[%c56_82, %c0_83], %77 {strides = array<i32>} : memref<72x648xf32, #tpu.memory_space<vmem>>, vector<8x648xf32>,
    %c0_84 = arith.constant 0 : index
    %c147_85 = arith.constant 147 : index
    %79 = vector.load %arg9[%c0_84, %c147_85] : memref<8x795xf32, #tpu.memory_space<vmem>>, vector<8x648xf32>
    %c64_86 = arith.constant 64 : index
    %c0_87 = arith.constant 0 : index
    %80 = vector.load %arg10[%c64_86, %c0_87] : memref<72x648xf32, #tpu.memory_space<vmem>>, vector<8x648xf32>
    tpu.vector_store %arg10[%c64_86, %c0_87], %79 {strides = array<i32>} : memref<72x648xf32, #tpu.memory_space<vmem>>, vector<8x648xf32>,
    %c0_88 = arith.constant 0 : index
    %c0_89 = arith.constant 0 : index
    %81 = vector.load %arg10[%c0_88, %c0_89] : memref<72x648xf32, #tpu.memory_space<vmem>>, vector<72x648xf32>
    %cst_90 = arith.constant dense<0.000000e+00> : vector<8x648xf32>
    %82 = tpu.matmul %5, %81, %cst_90 {dimension_numbers = #tpu.dot_dimension_numbers<[1], [0], [0], [1], [0, 0, 1, 1], [], []>} : vector<8x72xf32>, vector<72x648xf32>, vector<8x648xf32> -> vector<8x648xf32>
    %83 = vector.broadcast %0 : vector<1x648xf32> to vector<8x648xf32>
    %84 = arith.mulf %82, %83 : vector<8x648xf32>
    %cst_91 = arith.constant dense<0.000000e+00> : vector<8xf32>
    %85 = vector.multi_reduction <add>, %84, %cst_91 [1] : vector<8x648xf32> to vector<8xf32>
    %86 = vector.shape_cast %85 : vector<8xf32> to vector<8x1xf32>
    %cst_92 = arith.constant 0.001953125 : f32
    %87 = vector.broadcast %cst_92 : f32 to vector<8x1xf32>
    %88 = arith.mulf %86, %87 : vector<8x1xf32>
    %89 = vector.broadcast %88 : vector<8x1xf32> to vector<8x648xf32>
    %90 = arith.subf %82, %89 : vector<8x648xf32>
    %91 = vector.broadcast %0 : vector<1x648xf32> to vector<8x648xf32>
    %92 = arith.mulf %90, %91 : vector<8x648xf32>
    %93 = arith.mulf %92, %92 : vector<8x648xf32>
    %cst_93 = arith.constant dense<0.000000e+00> : vector<8xf32>
    %94 = vector.multi_reduction <add>, %93, %cst_93 [1] : vector<8x648xf32> to vector<8xf32>
    %95 = vector.shape_cast %94 : vector<8xf32> to vector<8x1xf32>
    %cst_94 = arith.constant 0.001953125 : f32
    %96 = vector.broadcast %cst_94 : f32 to vector<8x1xf32>
    %97 = arith.mulf %95, %96 : vector<8x1xf32>
    %cst_95 = arith.constant 9.99999974E-6 : f32
    %98 = vector.broadcast %cst_95 : f32 to vector<8x1xf32>
    %99 = arith.addf %97, %98 : vector<8x1xf32>
    %100 = math.rsqrt %99 : vector<8x1xf32>
    %101 = arith.mulf %6, %100 : vector<8x1xf32>
    %102 = arith.mulf %88, %101 : vector<8x1xf32>
    %103 = arith.subf %7, %102 : vector<8x1xf32>
    %104 = vector.broadcast %101 : vector<8x1xf32> to vector<8x648xf32>
    %105 = arith.mulf %82, %104 : vector<8x648xf32>
    %106 = vector.broadcast %103 : vector<8x1xf32> to vector<8x648xf32>
    %107 = arith.addf %105, %106 : vector<8x648xf32>
    %108 = arith.addf %107, %1 : vector<8x648xf32>
    %cst_96 = arith.constant 0.000000e+00 : f32
    %109 = vector.broadcast %cst_96 : f32 to vector<8x648xf32>
    %110 = arith.maximumf %108, %109 : vector<8x648xf32>
    %111 = vector.broadcast %0 : vector<1x648xf32> to vector<8x648xf32>
    %112 = arith.mulf %110, %111 : vector<8x648xf32>
    %c0_97 = arith.constant 0 : index
    %c0_98 = arith.constant 0 : index
    %113 = vector.load %arg8[%c0_97, %c0_98] : memref<8x648xf32, #tpu.memory_space<vmem>>, vector<8x648xf32>
    tpu.vector_store %arg8[%c0_97, %c0_98], %112 {strides = array<i32>} : memref<8x648xf32, #tpu.memory_space<vmem>>, vector<8x648xf32>,
    return
  }
}

</mosaic_0001>

<bundles_post_ra>
// kernel: tpu_custom_call.1
= control target key start
LH: loop header
LB: loop body
LE: loop exit
PB: predicated region body
PF: predicated region fallthrough
CT: control target
= control target key end

     0   :  { %13 = vsyncpa [#allocation5], 0  ;;  %s2173_s0 = inlined_call_operand.hbm [shape: f32[8,648], index: 0, kind: input, shape index: {}]   ;;  %s2174_s1 = inlined_call_operand.vmem [shape: f32[8,72], index: 1, kind: input, shape index: {}]   ;;  %s2175_s2 = inlined_call_operand.vmem [shape: f32[8,1], index: 2, kind: input, shape index: {}]   ;;  %s2176_s3 = inlined_call_operand.vmem [shape: f32[8,1], index: 3, kind: input, shape index: {}]   ;;  %s2177_s4 = inlined_call_operand.vmem [shape: f32[8,72], index: 4, kind: input, shape index: {}]   ;;  %s2178_s5 = inlined_call_operand.vmem [shape: f32[8,1], index: 5, kind: input, shape index: {}]   ;;  %s2179_s6 = inlined_call_operand.vmem [shape: f32[8,1], index: 6, kind: input, shape index: {}]   ;;  %s2180_s7 = inlined_call_operand.vmem [shape: f32[1,648], index: 7, kind: input, shape index: {}]   ;;  %s2181_s8 = inlined_call_operand.hbm [shape: f32[8,648], index: 8, kind: output, shape index: {}]  }
   0x1   :  { %14 = vsyncpa [#allocation6], 0  ;;  %s1616_s27 = smov [#allocation4]  }
   0x2   :  { %s21_s28 = sshll.u32 %s1616_s27, 4  ;;  %s22_s28 = int_to_ptr.vmem [resolvable:$true] %s21_s28 }
   0x3   :  { %s1580_s29 = scalar_lea.vmem %s22_s28, 768  ;;  %p1585_p1 = scmp.lt.s32.totalorder %s22_s28, %s22_s28 }
   0x4   :  { %p1581_p0 = scmp.ne.s32.totalorder %s22_s28, %s1580_s29  ;;  %p1586_p2 = scmp.lt.s32.totalorder %s1580_s29, %s1580_s29 }
   0x6   :  { %p1587_p3 = por %p1586_p2, %p1585_p1 }
   0x8   :  { %p1588_p4 = pnand %p1587_p3, %p1581_p0 }
   0xa   :  { %1591 = shalt.err (!%p1588_p4)
}
   0xb   :  { %24 = dma.hbm_to_vmem [thread:$0]  %s2173_s0, 768, %s22_s28, [#allocation5]  }
   0xc   :  { %1612 = dma.done.wait [#allocation5], 768  }
   0xd   :  { %1613 = vsyncadd [#allocation5], 4294966528  ;;  %vm61_vm0 = vcmask 220160   ;;  %v1617_v0 = vmov 0.0   ;;  %vm68_vm1 = vcmask 64512   ;;  %v1681_v1 = vld [vmem:[#allocation4 + $0x8] sm:$0xff] }
   0xe   :  { %806 = vst [vmem:[#allocation2] sm:$0xff] %v1617_v0  ;;  %62 = vst.msk [vmem:[#allocation2 + $0x30] sm:$0xff] %vm61_vm0, %v1617_v0  ;;  %545 = vmatprep.mubr.f32.mxu0 %v1617_v0  ;;  %616 = vmatprep.mubr.f32.mxu1 %v1617_v0  ;;  %v1683_v2 = vld [vmem:[#allocation4] sm:$0xff]  ;;  %s1618_s10 = smov 109   ;;  %v1689_v3 = vld [vmem:[#allocation4 + $0x28] sm:$0xff]  ;;  %s1619_s0 = smov 110  }
   0xf   :  { %395 = vrot.lane.b32.xlu0 %v1681_v1, %s1618_s10  ;;  %393 = vrot.lane.b32.xlu1 %v1683_v2, %s1618_s10  ;;  %v1691_v4 = vld [vmem:[#allocation4 + $0x10] sm:$0xff]  ;;  %69 = vst.msk [vmem:[#allocation2 + $0x30] sm:$0xff] %vm68_vm1, %v1689_v3  ;;  %s1620_s11 = smov 111   ;;  %s1621_s12 = smov 127   ;;  %v1734_v6 = vld [vmem:[#allocation4 + $0x18] sm:$0xff]  ;;  %v1740_v7 = vld [vmem:[#allocation4 + $0x20] sm:$0xff] }
  0x10   :  { %s1622_s13 = smov 1   ;;  %s1623_s14 = smov 17   ;;  %vm405_vm2 = vcmask 891904   ;;  %vm363_vm3 = vcmask 900096   ;;  %vm321_vm4 = vcmask 908288   ;;  %vm279_vm5 = vcmask 1039360  }
  0x11   :  { %s1624_s15 = smov 18   ;;  %s1625_s16 = smov 19   ;;  %vm224_vm6 = vcmask 7168   ;;  %vm178_vm7 = vcmask 138240   ;;  %vm136_vm8 = vcmask 146432   ;;  %vm94_vm9 = vcmask 154624  }
  0x12   :  { %v1835_v52 = vld [vmem:[%s2174_s1] sm:$0xff]  ;;  %vm477_vm10 = vcmask 588800  }
  0x13   :  { %397 = vrot.lane.b32.xlu0 %v1691_v4, %s1618_s10  ;;  %353 = vrot.lane.b32.xlu1 %v1681_v1, %s1619_s0 }
  0x16   :  { %v386_v5 = vld [vmem:[#allocation2 + $0x30] sm:$0xff] }
  0x17   :  { %355 = vrot.lane.b32.xlu0 %v1691_v4, %s1619_s0  ;;  %351 = vrot.lane.b32.xlu1 %v1683_v2, %s1619_s0  ;;  %254 = vst.msk [vmem:[#allocation3 + $0xe8] sm:$0xff] %vm68_vm1, %v386_v5 }
  0x18   :  { %812 = vst.msk [vmem:[#allocation2 + $0x30] sm:$0xff] %vm61_vm0, %v1617_v0 }
  0x1b   :  { %311 = vrot.lane.b32.xlu0 %v1681_v1, %s1620_s11  ;;  %313 = vrot.lane.b32.xlu1 %v1691_v4, %s1620_s11 }
  0x1f   :  { %269 = vrot.lane.b32.xlu1 %v1681_v1, %s1621_s12  ;;  %309 = vrot.lane.b32.xlu0 %v1683_v2, %s1620_s11 }
  0x23   :  { %271 = vrot.lane.b32.xlu0 %v1691_v4, %s1621_s12  ;;  %267 = vrot.lane.b32.xlu1 %v1683_v2, %s1621_s12 }
  0x27   :  { %214 = vrot.lane.b32.xlu1 %v1681_v1, %s1622_s13  ;;  %212 = vrot.lane.b32.xlu0 %v1683_v2, %s1622_s13 }
  0x2b   :  { %210 = vrot.lane.b32.xlu0 %v1617_v0, %s1622_s13  ;;  %168 = vrot.lane.b32.xlu1 %v1683_v2, %s1623_s14 }
  0x2f   :  { %170 = vrot.lane.b32.xlu0 %v1681_v1, %s1623_s14  ;;  %166 = vrot.lane.b32.xlu1 %v1617_v0, %s1623_s14 }
  0x33   :  { %128 = vrot.lane.b32.xlu1 %v1681_v1, %s1624_s15  ;;  %126 = vrot.lane.b32.xlu0 %v1683_v2, %s1624_s15 }
  0x37   :  { %399 = vrot.lane.b32.xlu1 %v1734_v6, %s1618_s10  ;;  %124 = vrot.lane.b32.xlu0 %v1617_v0, %s1624_s15 }
  0x3b   :  { %401 = vrot.lane.b32.xlu0 %v1740_v7, %s1618_s10  ;;  %84 = vrot.lane.b32.xlu1 %v1683_v2, %s1625_s16 }
  0x3f   :  { %86 = vrot.lane.b32.xlu0 %v1681_v1, %s1625_s16  ;;  %82 = vrot.lane.b32.xlu1 %v1617_v0, %s1625_s16 }
  0x43   :  { %357 = vrot.lane.b32.xlu0 %v1734_v6, %s1619_s0  ;;  %359 = vrot.lane.b32.xlu1 %v1740_v7, %s1619_s0 }
  0x47   :  { %315 = vrot.lane.b32.xlu0 %v1734_v6, %s1620_s11  ;;  %317 = vrot.lane.b32.xlu1 %v1740_v7, %s1620_s11 }
  0x4b   :  { %403 = vrot.lane.b32.xlu0 %v386_v5, %s1618_s10  ;;  %273 = vrot.lane.b32.xlu1 %v1734_v6, %s1621_s12 }
  0x4f   :  { %275 = vrot.lane.b32.xlu0 %v1740_v7, %s1621_s12  ;;  %361 = vrot.lane.b32.xlu1 %v386_v5, %s1619_s0 }
  0x53   :  { %319 = vrot.lane.b32.xlu0 %v386_v5, %s1620_s11  ;;  %216 = vrot.lane.b32.xlu1 %v1691_v4, %s1622_s13 }
  0x57   :  { %218 = vrot.lane.b32.xlu0 %v1734_v6, %s1622_s13  ;;  %277 = vrot.lane.b32.xlu1 %v386_v5, %s1621_s12 }
  0x5b   :  { %172 = vrot.lane.b32.xlu0 %v1691_v4, %s1623_s14  ;;  %174 = vrot.lane.b32.xlu1 %v1734_v6, %s1623_s14 }
  0x5f   :  { %220 = vrot.lane.b32.xlu0 %v1740_v7, %s1622_s13  ;;  %222 = vrot.lane.b32.xlu1 %v386_v5, %s1622_s13 }
  0x63   :  { %130 = vrot.lane.b32.xlu0 %v1691_v4, %s1624_s15  ;;  %132 = vrot.lane.b32.xlu1 %v1734_v6, %s1624_s15 }
  0x67   :  { %88 = vrot.lane.b32.xlu0 %v1691_v4, %s1625_s16  ;;  %90 = vrot.lane.b32.xlu1 %v1734_v6, %s1625_s16 }
  0x6b   :  { %176 = vrot.lane.b32.xlu0 %v1740_v7, %s1623_s14  ;;  %134 = vrot.lane.b32.xlu1 %v1740_v7, %s1624_s15 }
  0x6f   :  { %92 = vrot.lane.b32.xlu0 %v1740_v7, %s1625_s16 }
  0x81   :  { %v396_v8 = vpop.permute.xlu0 %395  ;;  %v394_v9 = vpop.permute.xlu1 %393 }
  0x82   :  { %v406_v13 = vsel %vm405_vm2, %v394_v9, %v396_v8 }
  0x85   :  { %v398_v10 = vpop.permute.xlu0 %397  ;;  %v354_v11 = vpop.permute.xlu1 %353 }
  0x86   :  { %v407_v12 = vsel %vm405_vm2, %v396_v8, %v398_v10 }
  0x87   :  { %495 = vmatprep.subr.mxu0 %v407_v12 }
  0x88   :  { %496 = vmatpush1.msra.mxu0 %v406_v13 }
  0x89   :  { %v1793_v14 = vpop.permute.xlu0 %355  ;;  %v352_v15 = vpop.permute.xlu1 %351 }
  0x8a   :  { %v365_v16 = vsel %vm363_vm3, %v354_v11, %v1793_v14  ;;  %v364_v17 = vsel %vm363_vm3, %v352_v15, %v354_v11 }
  0x8b   :  { %497 = vmatprep.subr.mxu0 %v365_v16 }
  0x8c   :  { %498 = vmatpush1.msra.mxu0 %v364_v17 }
  0x8d   :  { %v312_v18 = vpop.permute.xlu0 %311  ;;  %v1798_v19 = vpop.permute.xlu1 %313 }
  0x8e   :  { %v323_v20 = vsel %vm321_vm4, %v312_v18, %v1798_v19 }
  0x8f   :  { %499 = vmatprep.subr.mxu0 %v323_v20 }
  0x91   :  { %v270_v21 = vpop.permute.xlu1 %269  ;;  %v310_v22 = vpop.permute.xlu0 %309 }
  0x92   :  { %v322_v23 = vsel %vm321_vm4, %v310_v22, %v312_v18 }
  0x93   :  { %500 = vmatpush1.msra.mxu0 %v322_v23 }
  0x95   :  { %v1803_v24 = vpop.permute.xlu0 %271  ;;  %v268_v25 = vpop.permute.xlu1 %267 }
  0x96   :  { %v281_v26 = vsel %vm279_vm5, %v270_v21, %v1803_v24  ;;  %v280_v27 = vsel %vm279_vm5, %v268_v25, %v270_v21  ;;  %v452_v25 = vld [vmem:[#allocation3 + $0xe8] sm:$0xff] }
  0x97   :  { %501 = vmatprep.subr.mxu0 %v281_v26 }
  0x98   :  { %502 = vmatpush1.msra.mxu0 %v280_v27 }
  0x99   :  { %v1808_v28 = vpop.permute.xlu1 %214  ;;  %v213_v29 = vpop.permute.xlu0 %212  ;;  %503 = vmatprep.subr.mxu0 %v1681_v1 }
  0x9a   :  { %v226_v30 = vsel %vm224_vm6, %v213_v29, %v1808_v28  ;;  %504 = vmatpush1.msra.mxu0 %v1683_v2 }
  0x9b   :  { %505 = vmatprep.subr.mxu0 %v226_v30 }
  0x9d   :  { %v211_v31 = vpop.permute.xlu0 %210  ;;  %v169_v32 = vpop.permute.xlu1 %168 }
  0x9e   :  { %v225_v33 = vsel %vm224_vm6, %v211_v31, %v213_v29 }
  0x9f   :  { %506 = vmatpush1.msra.mxu0 %v225_v33 }
  0xa1   :  { %v1815_v34 = vpop.permute.xlu0 %170  ;;  %v167_v35 = vpop.permute.xlu1 %166 }
  0xa2   :  { %v180_v36 = vsel %vm178_vm7, %v169_v32, %v1815_v34  ;;  %v179_v37 = vsel %vm178_vm7, %v167_v35, %v169_v32 }
  0xa3   :  { %507 = vmatprep.subr.mxu0 %v180_v36 }
  0xa4   :  { %508 = vmatpush1.msra.mxu0 %v179_v37 }
  0xa5   :  { %v1820_v38 = vpop.permute.xlu1 %128  ;;  %v127_v39 = vpop.permute.xlu0 %126 }
  0xa6   :  { %v138_v40 = vsel %vm136_vm8, %v127_v39, %v1820_v38 }
  0xa7   :  { %509 = vmatprep.subr.mxu0 %v138_v40 }
  0xa9   :  { %v400_v41 = vpop.permute.xlu1 %399  ;;  %v125_v42 = vpop.permute.xlu0 %124 }
  0xaa   :  { %v137_v43 = vsel %vm136_vm8, %v125_v42, %v127_v39  ;;  %v408_v47 = vsel %vm405_vm2, %v398_v10, %v400_v41 }
  0xab   :  { %510 = vmatpush1.msra.mxu0 %v137_v43 }
  0xad   :  { %v402_v44 = vpop.permute.xlu0 %401  ;;  %v85_v45 = vpop.permute.xlu1 %84 }
  0xae   :  { %v409_v46 = vsel %vm405_vm2, %v400_v41, %v402_v44 }
  0xaf   :  { %566 = vmatprep.subr.mxu1 %v409_v46  ;;  %v695_v46 = vlaneseq }
  0xb0   :  { %567 = vmatpush1.msra.mxu1 %v408_v47 }
  0xb1   :  { %v1827_v48 = vpop.permute.xlu0 %86  ;;  %v83_v49 = vpop.permute.xlu1 %82  ;;  %v696_v47 = vshrl.u32 %v695_v46, 7 }
  0xb2   :  { %v96_v50 = vsel %vm94_vm9, %v85_v45, %v1827_v48  ;;  %v95_v51 = vsel %vm94_vm9, %v83_v49, %v85_v45 }
  0xb3   :  { %511 = vmatprep.subr.mxu0 %v96_v50  ;;  %v701_v49 = vsub.s32 1, %v696_v47  ;;  %v42_v50 = vld [vmem:[%s2180_s7] sm:$0x3f] }
  0xb4   :  { %512 = vmatpush1.msra.mxu0 %v95_v51 }
  0xb5   :  { %v358_v53 = vpop.permute.xlu0 %357  ;;  %v360_v54 = vpop.permute.xlu1 %359  ;;  %1542 = vmatmul.mubr.msk.f32.vlgmr.msra.gmra.mxu0 %vm477_vm10, %v1835_v52 }
  0xb6   :  { %v366_v55 = vsel %vm363_vm3, %v1793_v14, %v358_v53  ;;  %v367_v56 = vsel %vm363_vm3, %v358_v53, %v360_v54  ;;  %687 = vmatprep.mubr.f32.mxu0 %v1617_v0 }
  0xb7   :  { %568 = vmatprep.subr.mxu1 %v367_v56 }
  0xb8   :  { %569 = vmatpush1.msra.mxu1 %v366_v55  ;;  %v705_v55 = vsub.s32 2, %v696_v47 }
  0xb9   :  { %v316_v57 = vpop.permute.xlu0 %315  ;;  %v318_v58 = vpop.permute.xlu1 %317 }
  0xba   :  { %v324_v59 = vsel %vm321_vm4, %v1798_v19, %v316_v57  ;;  %v325_v60 = vsel %vm321_vm4, %v316_v57, %v318_v58 }
  0xbb   :  { %570 = vmatprep.subr.mxu1 %v325_v60 }
  0xbc   :  { %571 = vmatpush1.msra.mxu1 %v324_v59  ;;  %v709_v59 = vsub.s32 3, %v696_v47 }
  0xbd   :  { %v404_v61 = vpop.permute.xlu0 %403  ;;  %v274_v62 = vpop.permute.xlu1 %273 }
  0xbe   :  { %422 = vst.msk [vmem:[#allocation3 + $0x1a8] sm:$0xff] %vm68_vm1, %v404_v61  ;;  %v282_v5 = vsel %vm279_vm5, %v1803_v24, %v274_v62  ;;  %v410_v11 = vsel %vm405_vm2, %v402_v44, %v404_v61 }
  0xc1   :  { %v276_v63 = vpop.permute.xlu0 %275  ;;  %v362_v1 = vpop.permute.xlu1 %361 }
  0xc2   :  { %v283_v2 = vsel %vm279_vm5, %v274_v62, %v276_v63  ;;  %380 = vst.msk [vmem:[#allocation3 + $0x178] sm:$0xff] %vm68_vm1, %v362_v1  ;;  %v368_v15 = vsel %vm363_vm3, %v360_v54, %v362_v1  ;;  %v1894_v54 = vrot.slane %v42_v50, %v701_v49  ;;  %v713_v1 = vsub.s32 4, %v696_v47 }
  0xc3   :  { %572 = vmatprep.subr.mxu1 %v283_v2 }
  0xc4   :  { %573 = vmatpush1.msra.mxu1 %v282_v5  ;;  %v717_v5 = vsub.s32 5, %v696_v47 }
  0xc5   :  { %v320_v8 = vpop.permute.xlu0 %319  ;;  %v217_v9 = vpop.permute.xlu1 %216  ;;  %v476_v10 = vld [vmem:[#allocation3 + $0x1a8] sm:$0xff]  ;;  %574 = vmatprep.subr.mxu1 %v1734_v6 }
  0xc6   :  { %338 = vst.msk [vmem:[#allocation3 + $0x148] sm:$0xff] %vm68_vm1, %v320_v8  ;;  %637 = vmatprep.subr.mxu0 %v476_v10  ;;  %575 = vmatpush1.msra.mxu1 %v1691_v4  ;;  %v227_v6 = vsel %vm224_vm6, %v1808_v28, %v217_v9  ;;  %v326_v19 = vsel %vm321_vm4, %v318_v58, %v320_v8 }
  0xc7   :  { %638 = vmatpush1.msra.mxu0 %v410_v11  ;;  %v1902_v58 = vrot.slane %v42_v50, %v705_v55  ;;  %v1914_v10 = vrot.slane %v42_v50, %v713_v1  ;;  %v1916_v11 = vrot.slane %v42_v50, %v717_v5 }
  0xc9   :  { %v219_v12 = vpop.permute.xlu0 %218  ;;  %v278_v13 = vpop.permute.xlu1 %277  ;;  %v470_v14 = vld [vmem:[#allocation3 + $0x178] sm:$0xff] }
  0xca   :  { %v228_v16 = vsel %vm224_vm6, %v217_v9, %v219_v12  ;;  %296 = vst.msk [vmem:[#allocation3 + $0x118] sm:$0xff] %vm68_vm1, %v278_v13  ;;  %639 = vmatprep.subr.mxu0 %v470_v14  ;;  %v284_v26 = vsel %vm279_vm5, %v276_v63, %v278_v13  ;;  %v1908_v63 = vrot.slane %v42_v50, %v709_v59 }
  0xcb   :  { %640 = vmatpush1.msra.mxu0 %v368_v15  ;;  %576 = vmatprep.subr.mxu1 %v228_v16 }
  0xcc   :  { %577 = vmatpush1.msra.mxu1 %v227_v6 }
  0xcd   :  { %v173_v17 = vpop.permute.xlu0 %172  ;;  %v175_v18 = vpop.permute.xlu1 %174  ;;  %v464_v4 = vld [vmem:[#allocation3 + $0x148] sm:$0xff] }
  0xce   :  { %v181_v20 = vsel %vm178_vm7, %v1815_v34, %v173_v17  ;;  %v182_v21 = vsel %vm178_vm7, %v173_v17, %v175_v18  ;;  %641 = vmatprep.subr.mxu0 %v464_v4 }
  0xcf   :  { %642 = vmatpush1.msra.mxu0 %v326_v19  ;;  %578 = vmatprep.subr.mxu1 %v182_v21 }
  0xd0   :  { %579 = vmatpush1.msra.mxu1 %v181_v20 }
  0xd1   :  { %v221_v22 = vpop.permute.xlu0 %220  ;;  %v223_v23 = vpop.permute.xlu1 %222  ;;  %v458_v24 = vld [vmem:[#allocation3 + $0x118] sm:$0xff] }
  0xd2   :  { %v230_v27 = vsel %vm224_vm6, %v221_v22, %v223_v23  ;;  %643 = vmatprep.subr.mxu0 %v458_v24  ;;  %v229_v37 = vsel %vm224_vm6, %v219_v12, %v221_v22 }
  0xd3   :  { %242 = vst.msk [vmem:[#allocation3 + $0xb8] sm:$0xff] %vm68_vm1, %v230_v27  ;;  %644 = vmatpush1.msra.mxu0 %v284_v26 }
  0xd4   :  { %645 = vmatprep.subr.mxu0 %v452_v25 }
  0xd5   :  { %v131_v28 = vpop.permute.xlu0 %130  ;;  %v133_v29 = vpop.permute.xlu1 %132  ;;  %646 = vmatpush1.msra.mxu0 %v1740_v7 }
  0xd6   :  { %v139_v30 = vsel %vm136_vm8, %v1820_v38, %v131_v28  ;;  %v140_v31 = vsel %vm136_vm8, %v131_v28, %v133_v29 }
  0xd7   :  { %580 = vmatprep.subr.mxu1 %v140_v31 }
  0xd8   :  { %581 = vmatpush1.msra.mxu1 %v139_v30 }
  0xd9   :  { %v89_v32 = vpop.permute.xlu0 %88  ;;  %v91_v33 = vpop.permute.xlu1 %90 }
  0xda   :  { %v97_v34 = vsel %vm94_vm9, %v1827_v48, %v89_v32  ;;  %v98_v35 = vsel %vm94_vm9, %v89_v32, %v91_v33  ;;  %v446_v36 = vld [vmem:[#allocation3 + $0xb8] sm:$0xff]  ;;  %v697_v48 = vsub.s32 0, %v696_v47  ;;  %v50_v47 = vld [vmem:[%s2175_s2] sm:$0xff] }
  0xdb   :  { %647 = vmatprep.subr.mxu0 %v446_v36  ;;  %582 = vmatprep.subr.mxu1 %v98_v35 }
  0xdc   :  { %648 = vmatpush1.msra.mxu0 %v229_v37  ;;  %583 = vmatpush1.msra.mxu1 %v97_v34  ;;  %v1892_v53 = vrot.slane %v42_v50, %v697_v48  ;;  %v51_v50 = vld [vmem:[%s2176_s3] sm:$0xff] }
  0xdd   :  { %v177_v7 = vpop.permute.xlu0 %176  ;;  %v135_v38 = vpop.permute.xlu1 %134  ;;  %1543 = vmatmul.mubr.msk.f32.vlgmr.msra.gmra.mxu1 %vm477_vm10, %v1835_v52 }
  0xde   :  { %195 = vst.msk [vmem:[#allocation3 + $0x88] sm:$0xff] %vm68_vm1, %v177_v7  ;;  %153 = vst.msk [vmem:[#allocation3 + $0x58] sm:$0xff] %vm68_vm1, %v135_v38  ;;  %1285 = vmatprep.mubr.f32.mxu1 %v1617_v0  ;;  %v183_v42 = vsel %vm178_vm7, %v175_v18, %v177_v7  ;;  %v141_v43 = vsel %vm136_vm8, %v133_v29, %v135_v38 }
  0xe1   :  { %v93_v39 = vpop.permute.xlu0 %92 }
  0xe2   :  { %111 = vst.msk [vmem:[#allocation3 + $0x28] sm:$0xff] %vm68_vm1, %v93_v39  ;;  %v99_v45 = vsel %vm94_vm9, %v91_v33, %v93_v39 }
  0xe5   :  { %v440_v40 = vld [vmem:[#allocation3 + $0x88] sm:$0xff]  ;;  %v434_v41 = vld [vmem:[#allocation3 + $0x58] sm:$0xff] }
  0xe6   :  { %649 = vmatprep.subr.mxu0 %v440_v40 }
  0xe7   :  { %650 = vmatpush1.msra.mxu0 %v183_v42 }
  0xe8   :  { %651 = vmatprep.subr.mxu0 %v434_v41 }
  0xe9   :  { %652 = vmatpush1.msra.mxu0 %v141_v43  ;;  %v428_v44 = vld [vmem:[#allocation3 + $0x28] sm:$0xff]  ;;  %v1626_v43 = vmov 0  }
  0xea   :  { %653 = vmatprep.subr.mxu0 %v428_v44  ;;  %1560 = vset.pattern.permute.xlu0 %v1626_v43 }
  0xeb   :  { %654 = vmatpush1.msra.mxu0 %v99_v45  ;;  %1561 = vset.pattern.permute.xlu1 %v1626_v43 }
  0xec   :  { %1544 = vmatmul.mubr.msk.f32.vlgmr.msra.gmra.mxu0 %vm477_vm10, %v1835_v52 }
  0xed   :  { %1356 = vmatprep.mubr.f32.mxu0 %v1617_v0 }
 0x175   :  { %v1890_v51 = vpop.f32.mrf.mxu0 }
 0x176   :  { %v725_v52 = vmul.f32 %v1892_v53, %v1890_v51 }
 0x177   :  { %v1896_v56 = vpop.f32.mrf.mxu0 }
 0x178   :  { %v726_v57 = vmul.f32 %v1894_v54, %v1896_v56 }
 0x17a   :  { %v731_v61 = vadd.f32 %v726_v57, %v725_v52 }
 0x19d   :  { %v1904_v60 = vpop.f32.mrf.mxu1 }
 0x19e   :  { %v727_v62 = vmul.f32 %v1902_v58, %v1904_v60 }
 0x19f   :  { %v1910_v2 = vpop.f32.mrf.mxu1 }
 0x1a0   :  { %v732_v8 = vadd.f32 %v731_v61, %v727_v62  ;;  %v728_v9 = vmul.f32 %v1908_v63, %v1910_v2 }
 0x1a2   :  { %v733_v14 = vadd.f32 %v732_v8, %v728_v9 }
 0x1ac   :  { %v689_v12 = vpop.f32.mrf.mxu0 }
 0x1ad   :  { %v729_v13 = vmul.f32 %v1914_v10, %v689_v12 }
 0x1ae   :  { %v691_v15 = vpop.f32.mrf.mxu0 }
 0x1af   :  { %v730_v16 = vmul.f32 %v1916_v11, %v691_v15  ;;  %v734_v6 = vadd.f32 %v733_v14, %v729_v13 }
 0x1b1   :  { %v735_v17 = vsel %vm68_vm1, %v730_v16, 0.0 }
 0x1b2   :  { %v736_v18 = vadd.f32 %v735_v17, %v734_v6 }
 0x1b4   :  { %737 = vadd.xlane.f32.xlu1 %v736_v18 }
 0x23d   :  { %v738_v4 = vpop.xlane.xlu1 %737 }
 0x23e   :  { %v739_v19 = vmul.f32 0.001953125, %v738_v4 }
 0x240   :  { %v740_v20 = vsub.f32 %v1890_v51, %v739_v19  ;;  %v741_v21 = vsub.f32 %v1896_v56, %v739_v19  ;;  %v742_v22 = vsub.f32 %v1904_v60, %v739_v19  ;;  %v743_v23 = vsub.f32 %v1910_v2, %v739_v19 }
 0x241   :  { %v745_v24 = vsub.f32 %v691_v15, %v739_v19  ;;  %v744_v25 = vsub.f32 %v689_v12, %v739_v19 }
 0x242   :  { %v746_v26 = vmul.f32 %v740_v20, %v1892_v53  ;;  %v747_v27 = vmul.f32 %v741_v21, %v1894_v54  ;;  %v748_v28 = vmul.f32 %v742_v22, %v1902_v58  ;;  %v749_v29 = vmul.f32 %v743_v23, %v1908_v63 }
 0x243   :  { %v751_v32 = vmul.f32 %v745_v24, %v1916_v11  ;;  %v750_v33 = vmul.f32 %v744_v25, %v1914_v10 }
 0x244   :  { %v752_v30 = vmul.f32 %v746_v26, %v746_v26  ;;  %v753_v31 = vmul.f32 %v747_v27, %v747_v27  ;;  %v754_v34 = vmul.f32 %v748_v28, %v748_v28  ;;  %v755_v36 = vmul.f32 %v749_v29, %v749_v29 }
 0x245   :  { %v757_v7 = vmul.f32 %v751_v32, %v751_v32  ;;  %v756_v38 = vmul.f32 %v750_v33, %v750_v33 }
 0x246   :  { %v758_v35 = vadd.f32 %v753_v31, %v752_v30 }
 0x247   :  { %v762_v41 = vsel %vm68_vm1, %v757_v7, 0.0 }
 0x248   :  { %v759_v37 = vadd.f32 %v758_v35, %v754_v34 }
 0x24a   :  { %v760_v39 = vadd.f32 %v759_v37, %v755_v36 }
 0x24c   :  { %v761_v40 = vadd.f32 %v760_v39, %v756_v38 }
 0x24e   :  { %v763_v42 = vadd.f32 %v762_v41, %v761_v40 }
 0x250   :  { %764 = vadd.xlane.f32.xlu0 %v763_v42 }
 0x2d9   :  { %v765_v44 = vpop.xlane.xlu0 %764 }
 0x2da   :  { %v766_v45 = vmul.f32 0.001953125, %v765_v44 }
 0x2dc   :  { %v767_v46 = vadd.f32 1e-05, %v766_v45 }
 0x2de   :  { %1562 = vrsqrt.f32 %v767_v46 }
 0x2eb   :  { %v1563_v48 = vpop.eup %1562 }
 0x2ec   :  { %v769_v49 = vmul.f32 %v1563_v48, %v50_v47 }
 0x2ee   :  { %774 = vperm.xlu0 %1560, %v769_v49   ;;  %v770_v55 = vmul.f32 %v769_v49, %v739_v19 }
 0x2f0   :  { %v771_v52 = vsub.f32 %v51_v50, %v770_v55 }
 0x2f2   :  { %785 = vperm.xlu1 %1561, %v771_v52   ;;  %913 = vrot.lane.b32.xlu0 %v1617_v0, %s1623_s14 }
 0x2f6   :  { %956 = vrot.lane.b32.xlu1 %v1617_v0, %s1622_s13  ;;  %831 = vrot.lane.b32.xlu0 %v1617_v0, %s1625_s16 }
 0x2fa   :  { %872 = vrot.lane.b32.xlu1 %v1617_v0, %s1624_s15 }
 0x369   :  { %v775_v57 = vpop.permute.xlu0 %774 }
 0x36a   :  { %v777_v59 = vmul.f32 %v775_v57, %v1890_v51  ;;  %v778_v61 = vmul.f32 %v775_v57, %v1896_v56  ;;  %v779_v62 = vmul.f32 %v775_v57, %v1904_v60  ;;  %v780_v1 = vmul.f32 %v775_v57, %v1910_v2 }
 0x36b   :  { %v781_v5 = vmul.f32 %v775_v57, %v689_v12  ;;  %v782_v8 = vmul.f32 %v775_v57, %v691_v15 }
 0x36d   :  { %v786_v9 = vpop.permute.xlu1 %785  ;;  %v914_v24 = vpop.permute.xlu0 %913 }
 0x36e   :  { %v788_v13 = vadd.f32 %v786_v9, %v777_v59  ;;  %v789_v14 = vadd.f32 %v786_v9, %v778_v61  ;;  %v790_v16 = vadd.f32 %v786_v9, %v779_v62  ;;  %v791_v6 = vadd.f32 %v786_v9, %v780_v1 }
 0x36f   :  { %v792_v17 = vadd.f32 %v786_v9, %v781_v5  ;;  %v793_v18 = vadd.f32 %v786_v9, %v782_v8 }
 0x370   :  { %v794_v4 = vmax.f32 %v788_v13, 0.0  ;;  %v795_v0 = vmax.f32 %v789_v14, 0.0  ;;  %v796_v19 = vmax.f32 %v790_v16, 0.0  ;;  %v797_v20 = vmax.f32 %v791_v6, 0.0 }
 0x371   :  { %v798_v51 = vmax.f32 %v792_v17, 0.0  ;;  %v799_v21 = vmax.f32 %v793_v18, 0.0  ;;  %v957_v25 = vpop.permute.xlu1 %956  ;;  %v832_v26 = vpop.permute.xlu0 %831 }
 0x372   :  { %v1951_v56 = vmul.f32 %v794_v4, %v1892_v53  ;;  %v1954_v60 = vmul.f32 %v795_v0, %v1894_v54  ;;  %v1957_v2 = vmul.f32 %v796_v19, %v1902_v58  ;;  %v1960_v12 = vmul.f32 %v797_v20, %v1908_v63 }
 0x373   :  { %v1963_v15 = vmul.f32 %v798_v51, %v1914_v10  ;;  %v805_v22 = vmul.f32 %v799_v21, %v1916_v11 }
 0x374   :  { %1057 = vrot.lane.b32.xlu0 %v1957_v2, %s1620_s11  ;;  %1137 = vrot.lane.b32.xlu1 %v1954_v60, %s1618_s10 }
 0x375   :  { %818 = vst.msk [vmem:[#allocation2 + $0x30] sm:$0xff] %vm68_vm1, %v805_v22  ;;  %v873_v27 = vpop.permute.xlu1 %872 }
 0x378   :  { %1139 = vrot.lane.b32.xlu1 %v1957_v2, %s1618_s10  ;;  %1014 = vrot.lane.b32.xlu0 %v1954_v60, %s1621_s12 }
 0x37c   :  { %1135 = vrot.lane.b32.xlu1 %v1951_v56, %s1618_s10  ;;  %1012 = vrot.lane.b32.xlu0 %v1951_v56, %s1621_s12  ;;  %v1087_v23 = vld [vmem:[#allocation2 + $0x30] sm:$0xff] }
 0x37d   :  { %999 = vst.msk [vmem:[#allocation3 + $0xe8] sm:$0xff] %vm68_vm1, %v1087_v23 }
 0x380   :  { %1096 = vrot.lane.b32.xlu1 %v1954_v60, %s1619_s0  ;;  %960 = vrot.lane.b32.xlu0 %v1954_v60, %s1622_s13 }
 0x384   :  { %1098 = vrot.lane.b32.xlu1 %v1957_v2, %s1619_s0  ;;  %915 = vrot.lane.b32.xlu0 %v1951_v56, %s1623_s14 }
 0x388   :  { %1094 = vrot.lane.b32.xlu1 %v1951_v56, %s1619_s0  ;;  %876 = vrot.lane.b32.xlu0 %v1954_v60, %s1624_s15 }
 0x38c   :  { %1055 = vrot.lane.b32.xlu1 %v1954_v60, %s1620_s11  ;;  %1141 = vrot.lane.b32.xlu0 %v1960_v12, %s1618_s10 }
 0x390   :  { %1053 = vrot.lane.b32.xlu1 %v1951_v56, %s1620_s11  ;;  %833 = vrot.lane.b32.xlu0 %v1951_v56, %s1625_s16 }
 0x394   :  { %1016 = vrot.lane.b32.xlu1 %v1957_v2, %s1621_s12  ;;  %1102 = vrot.lane.b32.xlu0 %v1963_v15, %s1619_s0 }
 0x398   :  { %958 = vrot.lane.b32.xlu1 %v1951_v56, %s1622_s13  ;;  %1061 = vrot.lane.b32.xlu0 %v1963_v15, %s1620_s11 }
 0x39c   :  { %917 = vrot.lane.b32.xlu1 %v1954_v60, %s1623_s14  ;;  %1018 = vrot.lane.b32.xlu0 %v1960_v12, %s1621_s12 }
 0x3a0   :  { %874 = vrot.lane.b32.xlu1 %v1951_v56, %s1624_s15  ;;  %1104 = vrot.lane.b32.xlu0 %v1087_v23, %s1619_s0 }
 0x3a4   :  { %1143 = vrot.lane.b32.xlu1 %v1963_v15, %s1618_s10  ;;  %962 = vrot.lane.b32.xlu0 %v1957_v2, %s1622_s13 }
 0x3a8   :  { %835 = vrot.lane.b32.xlu1 %v1954_v60, %s1625_s16  ;;  %1022 = vrot.lane.b32.xlu0 %v1087_v23, %s1621_s12 }
 0x3ac   :  { %1100 = vrot.lane.b32.xlu1 %v1960_v12, %s1619_s0  ;;  %921 = vrot.lane.b32.xlu0 %v1960_v12, %s1623_s14 }
 0x3b0   :  { %1059 = vrot.lane.b32.xlu1 %v1960_v12, %s1620_s11  ;;  %968 = vrot.lane.b32.xlu0 %v1087_v23, %s1622_s13 }
 0x3b4   :  { %1145 = vrot.lane.b32.xlu1 %v1087_v23, %s1618_s10  ;;  %880 = vrot.lane.b32.xlu0 %v1960_v12, %s1624_s15 }
 0x3b8   :  { %1020 = vrot.lane.b32.xlu1 %v1963_v15, %s1621_s12  ;;  %839 = vrot.lane.b32.xlu0 %v1960_v12, %s1625_s16 }
 0x3bc   :  { %1063 = vrot.lane.b32.xlu1 %v1087_v23, %s1620_s11  ;;  %882 = vrot.lane.b32.xlu0 %v1963_v15, %s1624_s15  ;;  %v2095_v23 = vld [vmem:[%s2177_s4] sm:$0xff] }
 0x3c0   :  { %964 = vrot.lane.b32.xlu1 %v1960_v12, %s1622_s13 }
 0x3c4   :  { %919 = vrot.lane.b32.xlu1 %v1957_v2, %s1623_s14 }
 0x3c8   :  { %966 = vrot.lane.b32.xlu1 %v1963_v15, %s1622_s13 }
 0x3cc   :  { %878 = vrot.lane.b32.xlu1 %v1957_v2, %s1624_s15 }
 0x3d0   :  { %837 = vrot.lane.b32.xlu1 %v1957_v2, %s1625_s16 }
 0x3d4   :  { %923 = vrot.lane.b32.xlu1 %v1963_v15, %s1623_s14 }
 0x3d8   :  { %841 = vrot.lane.b32.xlu1 %v1963_v15, %s1625_s16 }
 0x3e6   :  { %v2053_v28 = vpop.permute.xlu0 %1057  ;;  %v1138_v29 = vpop.permute.xlu1 %1137 }
 0x3ea   :  { %v1015_v30 = vpop.permute.xlu0 %1014  ;;  %v1140_v31 = vpop.permute.xlu1 %1139 }
 0x3eb   :  { %v1148_v32 = vsel %vm405_vm2, %v1138_v29, %v1140_v31 }
 0x3ec   :  { %1235 = vmatprep.subr.mxu1 %v1148_v32 }
 0x3ee   :  { %v1013_v33 = vpop.permute.xlu0 %1012  ;;  %v1136_v34 = vpop.permute.xlu1 %1135 }
 0x3ef   :  { %v1024_v35 = vsel %vm279_vm5, %v1013_v33, %v1015_v30  ;;  %v1147_v36 = vsel %vm405_vm2, %v1136_v34, %v1138_v29  ;;  %v1566_v29 = vld [vmem:[#allocation2] sm:$0xff] }
 0x3f0   :  { %1236 = vmatpush1.msra.mxu1 %v1147_v36 }
 0x3f2   :  { %v961_v37 = vpop.permute.xlu0 %960  ;;  %v1097_v7 = vpop.permute.xlu1 %1096 }
 0x3f6   :  { %v916_v38 = vpop.permute.xlu0 %915  ;;  %v1099_v39 = vpop.permute.xlu1 %1098 }
 0x3f7   :  { %v925_v40 = vsel %vm178_vm7, %v914_v24, %v916_v38  ;;  %v1107_v41 = vsel %vm363_vm3, %v1097_v7, %v1099_v39 }
 0x3f8   :  { %1237 = vmatprep.subr.mxu1 %v1107_v41 }
 0x3fa   :  { %v2060_v42 = vpop.permute.xlu0 %876  ;;  %v1095_v43 = vpop.permute.xlu1 %1094 }
 0x3fb   :  { %v1106_v44 = vsel %vm363_vm3, %v1095_v43, %v1097_v7 }
 0x3fc   :  { %1238 = vmatpush1.msra.mxu1 %v1106_v44 }
 0x3fe   :  { %v1142_v45 = vpop.permute.xlu0 %1141  ;;  %v1056_v46 = vpop.permute.xlu1 %1055 }
 0x3ff   :  { %v1149_v47 = vsel %vm405_vm2, %v1140_v31, %v1142_v45  ;;  %v1066_v48 = vsel %vm321_vm4, %v1056_v46, %v2053_v28 }
 0x400   :  { %1239 = vmatprep.subr.mxu1 %v1066_v48 }
 0x402   :  { %v834_v49 = vpop.permute.xlu0 %833  ;;  %v1054_v50 = vpop.permute.xlu1 %1053 }
 0x403   :  { %v843_v55 = vsel %vm94_vm9, %v832_v26, %v834_v49  ;;  %v1065_v52 = vsel %vm321_vm4, %v1054_v50, %v1056_v46 }
 0x404   :  { %1240 = vmatpush1.msra.mxu1 %v1065_v52  ;;  %v1193_v52 = vld [vmem:[#allocation3 + $0xe8] sm:$0xff] }
 0x406   :  { %v1103_v57 = vpop.permute.xlu0 %1102  ;;  %v1017_v59 = vpop.permute.xlu1 %1016 }
 0x407   :  { %v1025_v61 = vsel %vm279_vm5, %v1015_v30, %v1017_v59 }
 0x408   :  { %1241 = vmatprep.subr.mxu1 %v1025_v61 }
 0x409   :  { %1242 = vmatpush1.msra.mxu1 %v1024_v35 }
 0x40a   :  { %v2069_v62 = vpop.permute.xlu0 %1061  ;;  %v959_v1 = vpop.permute.xlu1 %958  ;;  %1243 = vmatprep.subr.mxu1 %v1954_v60 }
 0x40b   :  { %v970_v5 = vsel %vm224_vm6, %v957_v25, %v959_v1  ;;  %v971_v8 = vsel %vm224_vm6, %v959_v1, %v961_v37  ;;  %1244 = vmatpush1.msra.mxu1 %v1951_v56 }
 0x40c   :  { %1245 = vmatprep.subr.mxu1 %v971_v8 }
 0x40d   :  { %1246 = vmatpush1.msra.mxu1 %v970_v5 }
 0x40e   :  { %v1019_v9 = vpop.permute.xlu0 %1018  ;;  %v2075_v13 = vpop.permute.xlu1 %917 }
 0x40f   :  { %v1026_v14 = vsel %vm279_vm5, %v1017_v59, %v1019_v9  ;;  %v926_v16 = vsel %vm178_vm7, %v916_v38, %v2075_v13 }
 0x410   :  { %1247 = vmatprep.subr.mxu1 %v926_v16 }
 0x411   :  { %1248 = vmatpush1.msra.mxu1 %v925_v40 }
 0x412   :  { %v1105_v6 = vpop.permute.xlu0 %1104  ;;  %v875_v17 = vpop.permute.xlu1 %874 }
 0x413   :  { %v1110_v18 = vsel %vm363_vm3, %v1103_v57, %v1105_v6  ;;  %1122 = vst.msk [vmem:[#allocation3 + $0x178] sm:$0xff] %vm68_vm1, %v1105_v6  ;;  %v884_v4 = vsel %vm136_vm8, %v873_v27, %v875_v17  ;;  %v885_v0 = vsel %vm136_vm8, %v875_v17, %v2060_v42 }
 0x414   :  { %1249 = vmatprep.subr.mxu1 %v885_v0 }
 0x415   :  { %1250 = vmatpush1.msra.mxu1 %v884_v4 }
 0x416   :  { %v963_v19 = vpop.permute.xlu0 %962  ;;  %v1144_v20 = vpop.permute.xlu1 %1143 }
 0x417   :  { %v972_v51 = vsel %vm224_vm6, %v961_v37, %v963_v19  ;;  %v1150_v21 = vsel %vm405_vm2, %v1142_v45, %v1144_v20 }
 0x418   :  { %1306 = vmatprep.subr.mxu0 %v1150_v21 }
 0x419   :  { %1307 = vmatpush1.msra.mxu0 %v1149_v47 }
 0x41a   :  { %v1023_v56 = vpop.permute.xlu0 %1022  ;;  %v2087_v60 = vpop.permute.xlu1 %835  ;;  %v1211_v45 = vld [vmem:[#allocation3 + $0x178] sm:$0xff] }
 0x41b   :  { %1040 = vst.msk [vmem:[#allocation3 + $0x118] sm:$0xff] %vm68_vm1, %v1023_v56  ;;  %v844_v22 = vsel %vm94_vm9, %v834_v49, %v2087_v60 }
 0x41c   :  { %1251 = vmatprep.subr.mxu1 %v844_v22 }
 0x41d   :  { %1252 = vmatpush1.msra.mxu1 %v843_v55 }
 0x41e   :  { %v2097_v24 = vpop.permute.xlu0 %921  ;;  %v1101_v25 = vpop.permute.xlu1 %1100  ;;  %1545 = vmatmul.mubr.msk.f32.vlgmr.msra.gmra.mxu1 %vm477_vm10, %v2095_v23 }
 0x41f   :  { %v1108_v26 = vsel %vm363_vm3, %v1099_v39, %v1101_v25  ;;  %v1109_v27 = vsel %vm363_vm3, %v1101_v25, %v1103_v57  ;;  %1427 = vmatprep.mubr.f32.mxu1 %v1566_v29 }
 0x420   :  { %1308 = vmatprep.subr.mxu0 %v1109_v27 }
 0x421   :  { %1309 = vmatpush1.msra.mxu0 %v1108_v26 }
 0x422   :  { %v969_v30 = vpop.permute.xlu0 %968  ;;  %v1060_v31 = vpop.permute.xlu1 %1059 }
 0x423   :  { %v1067_v32 = vsel %vm321_vm4, %v2053_v28, %v1060_v31  ;;  %v1068_v33 = vsel %vm321_vm4, %v1060_v31, %v2069_v62 }
 0x424   :  { %1310 = vmatprep.subr.mxu0 %v1068_v33 }
 0x425   :  { %1311 = vmatpush1.msra.mxu0 %v1067_v32 }
 0x426   :  { %v881_v34 = vpop.permute.xlu0 %880  ;;  %v1146_v35 = vpop.permute.xlu1 %1145 }
 0x427   :  { %v1151_v36 = vsel %vm405_vm2, %v1144_v20, %v1146_v35  ;;  %1163 = vst.msk [vmem:[#allocation3 + $0x1a8] sm:$0xff] %vm68_vm1, %v1146_v35 }
 0x42a   :  { %v840_v37 = vpop.permute.xlu0 %839  ;;  %v1021_v7 = vpop.permute.xlu1 %1020 }
 0x42b   :  { %v1027_v38 = vsel %vm279_vm5, %v1019_v9, %v1021_v7  ;;  %v1028_v39 = vsel %vm279_vm5, %v1021_v7, %v1023_v56 }
 0x42c   :  { %1312 = vmatprep.subr.mxu0 %v1027_v38 }
 0x42d   :  { %1313 = vmatpush1.msra.mxu0 %v1026_v14 }
 0x42e   :  { %v883_v28 = vpop.permute.xlu0 %882  ;;  %v1064_v40 = vpop.permute.xlu1 %1063  ;;  %v1217_v41 = vld [vmem:[#allocation3 + $0x1a8] sm:$0xff]  ;;  %1314 = vmatprep.subr.mxu0 %v1960_v12 }
 0x42f   :  { %v888_v43 = vsel %vm136_vm8, %v881_v34, %v883_v28  ;;  %900 = vst.msk [vmem:[#allocation3 + $0x58] sm:$0xff] %vm68_vm1, %v883_v28  ;;  %v1069_v44 = vsel %vm321_vm4, %v2069_v62, %v1064_v40  ;;  %1081 = vst.msk [vmem:[#allocation3 + $0x148] sm:$0xff] %vm68_vm1, %v1064_v40  ;;  %1377 = vmatprep.subr.mxu1 %v1217_v41  ;;  %1315 = vmatpush1.msra.mxu0 %v1957_v2  ;;  %v1199_v2 = vld [vmem:[#allocation3 + $0x118] sm:$0xff] }
 0x430   :  { %1378 = vmatpush1.msra.mxu1 %v1151_v36 }
 0x431   :  { %1379 = vmatprep.subr.mxu1 %v1211_v45 }
 0x432   :  { %1380 = vmatpush1.msra.mxu1 %v1110_v18  ;;  %v965_v46 = vpop.permute.xlu1 %964 }
 0x433   :  { %v973_v47 = vsel %vm224_vm6, %v963_v19, %v965_v46 }
 0x434   :  { %1316 = vmatprep.subr.mxu0 %v973_v47 }
 0x435   :  { %1317 = vmatpush1.msra.mxu0 %v972_v51 }
 0x436   :  { %v920_v12 = vpop.permute.xlu1 %919  ;;  %v1205_v48 = vld [vmem:[#allocation3 + $0x148] sm:$0xff]  ;;  %v1175_v17 = vld [vmem:[#allocation3 + $0x58] sm:$0xff] }
 0x437   :  { %v927_v49 = vsel %vm178_vm7, %v2075_v13, %v920_v12  ;;  %v928_v50 = vsel %vm178_vm7, %v920_v12, %v2097_v24  ;;  %1381 = vmatprep.subr.mxu1 %v1205_v48 }
 0x438   :  { %1382 = vmatpush1.msra.mxu1 %v1069_v44  ;;  %1318 = vmatprep.subr.mxu0 %v928_v50 }
 0x439   :  { %1383 = vmatprep.subr.mxu1 %v1199_v2  ;;  %1319 = vmatpush1.msra.mxu0 %v927_v49 }
 0x43a   :  { %1384 = vmatpush1.msra.mxu1 %v1028_v39  ;;  %v967_v55 = vpop.permute.xlu1 %966 }
 0x43b   :  { %v974_v57 = vsel %vm224_vm6, %v965_v46, %v967_v55  ;;  %v975_v59 = vsel %vm224_vm6, %v967_v55, %v969_v30  ;;  %1385 = vmatprep.subr.mxu1 %v1193_v52 }
 0x43c   :  { %987 = vst.msk [vmem:[#allocation3 + $0xb8] sm:$0xff] %vm68_vm1, %v975_v59  ;;  %1386 = vmatpush1.msra.mxu1 %v1963_v15 }
 0x43e   :  { %v879_v61 = vpop.permute.xlu1 %878 }
 0x43f   :  { %v886_v62 = vsel %vm136_vm8, %v2060_v42, %v879_v61  ;;  %v887_v1 = vsel %vm136_vm8, %v879_v61, %v881_v34 }
 0x440   :  { %1320 = vmatprep.subr.mxu0 %v887_v1 }
 0x441   :  { %1321 = vmatpush1.msra.mxu0 %v886_v62 }
 0x442   :  { %v838_v5 = vpop.permute.xlu1 %837 }
 0x443   :  { %v845_v8 = vsel %vm94_vm9, %v2087_v60, %v838_v5  ;;  %v846_v9 = vsel %vm94_vm9, %v838_v5, %v840_v37  ;;  %v1187_v13 = vld [vmem:[#allocation3 + $0xb8] sm:$0xff] }
 0x444   :  { %1387 = vmatprep.subr.mxu1 %v1187_v13  ;;  %1322 = vmatprep.subr.mxu0 %v846_v9 }
 0x445   :  { %1388 = vmatpush1.msra.mxu1 %v974_v57  ;;  %1323 = vmatpush1.msra.mxu0 %v845_v8  ;;  %v53_v8 = vld [vmem:[%s2178_s5] sm:$0xff]  ;;  %s1627_s5 = smov [#allocation7]  }
 0x446   :  { %v924_v15 = vpop.permute.xlu1 %923  ;;  %1546 = vmatmul.mubr.msk.f32.vlgmr.msra.gmra.mxu0 %vm477_vm10, %v2095_v23 }
 0x447   :  { %v929_v42 = vsel %vm178_vm7, %v2097_v24, %v924_v15  ;;  %941 = vst.msk [vmem:[#allocation3 + $0x88] sm:$0xff] %vm68_vm1, %v924_v15  ;;  %v54_v15 = vld [vmem:[%s2179_s6] sm:$0xff]  ;;  %s1533_s6 = sshll.u32 %s1627_s5, 4  ;;  %s1534_s6 = int_to_ptr.vmem [resolvable:$true] %s1533_s6 }
 0x448   :  { %s1592_s26 = scalar_lea.vmem %s1534_s6, 768  ;;  %p1597_p6 = scmp.lt.s32.totalorder %s1534_s6, %s1534_s6 }
 0x449   :  { %p1593_p5 = scmp.ne.s32.totalorder %s1534_s6, %s1592_s26  ;;  %p1598_p7 = scmp.lt.s32.totalorder %s1592_s26, %s1592_s26 }
 0x44a   :  { %v842_v14 = vpop.permute.xlu1 %841 }
 0x44b   :  { %v847_v16 = vsel %vm94_vm9, %v840_v37, %v842_v14  ;;  %859 = vst.msk [vmem:[#allocation3 + $0x28] sm:$0xff] %vm68_vm1, %v842_v14  ;;  %p1599_p8 = por %p1598_p7, %p1597_p6 }
 0x44d   :  { %p1600_p9 = pnand %p1599_p8, %p1593_p5 }
 0x44e   :  { %v1181_v6 = vld [vmem:[#allocation3 + $0x88] sm:$0xff] }
 0x44f   :  { %1389 = vmatprep.subr.mxu1 %v1181_v6 }
 0x450   :  { %1390 = vmatpush1.msra.mxu1 %v929_v42 }
 0x451   :  { %1391 = vmatprep.subr.mxu1 %v1175_v17 }
 0x452   :  { %1392 = vmatpush1.msra.mxu1 %v888_v43  ;;  %v1169_v18 = vld [vmem:[#allocation3 + $0x28] sm:$0xff] }
 0x453   :  { %1393 = vmatprep.subr.mxu1 %v1169_v18 }
 0x454   :  { %1394 = vmatpush1.msra.mxu1 %v847_v16 }
 0x455   :  { %1547 = vmatmul.mubr.msk.f32.vlgmr.msra.gmra.mxu1 %vm477_vm10, %v2095_v23 }
 0x4de   :  { %v1287_v4 = vpop.f32.mrf.mxu1 }
 0x4df   :  { %v1434_v19 = vmul.f32 %v1287_v4, %v1892_v53 }
 0x4e0   :  { %v1289_v0 = vpop.f32.mrf.mxu1 }
 0x4e1   :  { %v1435_v20 = vmul.f32 %v1289_v0, %v1894_v54 }
 0x4e3   :  { %v1440_v21 = vadd.f32 %v1435_v20, %v1434_v19 }
 0x506   :  { %v1358_v51 = vpop.f32.mrf.mxu0 }
 0x507   :  { %v1436_v56 = vmul.f32 %v1358_v51, %v1902_v58 }
 0x508   :  { %v1360_v60 = vpop.f32.mrf.mxu0 }
 0x509   :  { %v1441_v22 = vadd.f32 %v1440_v21, %v1436_v56  ;;  %v1437_v24 = vmul.f32 %v1360_v60, %v1908_v63 }
 0x50b   :  { %v1442_v26 = vadd.f32 %v1441_v22, %v1437_v24 }
 0x515   :  { %v1429_v25 = vpop.f32.mrf.mxu1 }
 0x516   :  { %v1438_v27 = vmul.f32 %v1429_v25, %v1914_v10 }
 0x517   :  { %v1431_v29 = vpop.f32.mrf.mxu1 }
 0x518   :  { %v1439_v23 = vmul.f32 %v1431_v29, %v1916_v11  ;;  %v1443_v30 = vadd.f32 %v1442_v26, %v1438_v27 }
 0x51a   :  { %v1444_v31 = vsel %vm68_vm1, %v1439_v23, 0.0 }
 0x51b   :  { %v1445_v32 = vadd.f32 %v1444_v31, %v1443_v30  ;;  %v1567_v31 = vld [vmem:[#allocation4] sm:$0xff] }
 0x51d   :  { %1446 = vadd.xlane.f32.xlu0 %v1445_v32 }
 0x5a6   :  { %v1447_v33 = vpop.xlane.xlu0 %1446 }
 0x5a7   :  { %v1448_v34 = vmul.f32 0.001953125, %v1447_v33  ;;  %v1568_v33 = vld [vmem:[#allocation4 + $0x8] sm:$0xff] }
 0x5a9   :  { %v1449_v35 = vsub.f32 %v1287_v4, %v1448_v34  ;;  %v1450_v36 = vsub.f32 %v1289_v0, %v1448_v34  ;;  %v1451_v37 = vsub.f32 %v1358_v51, %v1448_v34  ;;  %v1452_v7 = vsub.f32 %v1360_v60, %v1448_v34 }
 0x5aa   :  { %v1454_v38 = vsub.f32 %v1431_v29, %v1448_v34  ;;  %v1453_v39 = vsub.f32 %v1429_v25, %v1448_v34 }
 0x5ab   :  { %v1455_v28 = vmul.f32 %v1449_v35, %v1892_v53  ;;  %v1456_v40 = vmul.f32 %v1450_v36, %v1894_v54  ;;  %v1457_v41 = vmul.f32 %v1451_v37, %v1902_v58  ;;  %v1458_v43 = vmul.f32 %v1452_v7, %v1908_v63  ;;  %v1569_v35 = vld [vmem:[#allocation4 + $0x10] sm:$0xff]  ;;  %v1570_v37 = vld [vmem:[#allocation4 + $0x18] sm:$0xff] }
 0x5ac   :  { %v1460_v46 = vmul.f32 %v1454_v38, %v1916_v11  ;;  %v1459_v47 = vmul.f32 %v1453_v39, %v1914_v10 }
 0x5ad   :  { %v1461_v44 = vmul.f32 %v1455_v28, %v1455_v28  ;;  %v1462_v45 = vmul.f32 %v1456_v40, %v1456_v40  ;;  %v1463_v12 = vmul.f32 %v1457_v41, %v1457_v41  ;;  %v1464_v49 = vmul.f32 %v1458_v43, %v1458_v43 }
 0x5ae   :  { %v1466_v2 = vmul.f32 %v1460_v46, %v1460_v46  ;;  %v1465_v55 = vmul.f32 %v1459_v47, %v1459_v47 }
 0x5af   :  { %v1467_v48 = vadd.f32 %v1462_v45, %v1461_v44 }
 0x5b0   :  { %v1471_v59 = vsel %vm68_vm1, %v1466_v2, 0.0 }
 0x5b1   :  { %v1468_v50 = vadd.f32 %v1467_v48, %v1463_v12 }
 0x5b3   :  { %v1469_v52 = vadd.f32 %v1468_v50, %v1464_v49 }
 0x5b5   :  { %v1470_v57 = vadd.f32 %v1469_v52, %v1465_v55 }
 0x5b7   :  { %v1472_v61 = vadd.f32 %v1471_v59, %v1470_v57 }
 0x5b9   :  { %1473 = vadd.xlane.f32.xlu1 %v1472_v61 }
 0x642   :  { %v1474_v62 = vpop.xlane.xlu1 %1473 }
 0x643   :  { %v1475_v1 = vmul.f32 0.001953125, %v1474_v62 }
 0x645   :  { %v1476_v5 = vadd.f32 1e-05, %v1475_v1 }
 0x647   :  { %1564 = vrsqrt.f32 %v1476_v5 }
 0x654   :  { %v1565_v9 = vpop.eup %1564 }
 0x655   :  { %v1478_v13 = vmul.f32 %v1565_v9, %v53_v8 }
 0x657   :  { %1483 = vperm.xlu0 %1560, %v1478_v13   ;;  %v1479_v42 = vmul.f32 %v1478_v13, %v1448_v34 }
 0x659   :  { %v1480_v14 = vsub.f32 %v54_v15, %v1479_v42 }
 0x65b   :  { %1494 = vperm.xlu1 %1561, %v1480_v14  }
 0x6d2   :  { %v1484_v16 = vpop.permute.xlu0 %1483 }
 0x6d3   :  { %v1486_v6 = vmul.f32 %v1484_v16, %v1287_v4  ;;  %v1487_v17 = vmul.f32 %v1484_v16, %v1289_v0  ;;  %v1488_v18 = vmul.f32 %v1484_v16, %v1358_v51  ;;  %v1489_v19 = vmul.f32 %v1484_v16, %v1360_v60  ;;  %v1571_v0 = vld [vmem:[#allocation4 + $0x20] sm:$0xff] }
 0x6d4   :  { %v1490_v20 = vmul.f32 %v1484_v16, %v1429_v25  ;;  %v1491_v21 = vmul.f32 %v1484_v16, %v1431_v29 }
 0x6d6   :  { %v1495_v56 = vpop.permute.xlu1 %1494 }
 0x6d7   :  { %v1497_v22 = vadd.f32 %v1495_v56, %v1486_v6  ;;  %v1498_v24 = vadd.f32 %v1495_v56, %v1487_v17  ;;  %v1499_v26 = vadd.f32 %v1495_v56, %v1488_v18  ;;  %v1500_v27 = vadd.f32 %v1495_v56, %v1489_v19 }
 0x6d8   :  { %v1501_v23 = vadd.f32 %v1495_v56, %v1490_v20  ;;  %v1502_v30 = vadd.f32 %v1495_v56, %v1491_v21 }
 0x6d9   :  { %v1503_v32 = vadd.f32 %v1567_v31, %v1497_v22  ;;  %v1504_v34 = vadd.f32 %v1568_v33, %v1498_v24  ;;  %v1505_v36 = vadd.f32 %v1569_v35, %v1499_v26  ;;  %v1506_v4 = vadd.f32 %v1570_v37, %v1500_v27 }
 0x6da   :  { %v1507_v51 = vadd.f32 %v1571_v0, %v1501_v23  ;;  %v1508_v60 = vadd.f32 %v1502_v30, %v1689_v3 }
 0x6db   :  { %v1509_v25 = vmax.f32 %v1503_v32, 0.0  ;;  %v1510_v29 = vmax.f32 %v1504_v34, 0.0  ;;  %v1511_v7 = vmax.f32 %v1505_v36, 0.0  ;;  %v1512_v38 = vmax.f32 %v1506_v4, 0.0 }
 0x6dc   :  { %v1513_v39 = vmax.f32 %v1507_v51, 0.0  ;;  %v1514_v28 = vmax.f32 %v1508_v60, 0.0 }
 0x6dd   :  { %v1515_v40 = vmul.f32 %v1509_v25, %v1892_v53  ;;  %v1516_v41 = vmul.f32 %v1510_v29, %v1894_v54  ;;  %v1517_v43 = vmul.f32 %v1511_v7, %v1902_v58  ;;  %v1518_v44 = vmul.f32 %v1512_v38, %v1908_v63 }
 0x6de   :  { %v1519_v45 = vmul.f32 %v1513_v39, %v1914_v10  ;;  %v1520_v3 = vmul.f32 %v1514_v28, %v1916_v11 }
 0x6df   :  { %1521 = vst [vmem:[#allocation7] sm:$0xff] %v1515_v40  ;;  %1522 = vst [vmem:[#allocation7 + $0x8] sm:$0xff] %v1516_v41 }
 0x6e0   :  { %1523 = vst [vmem:[#allocation7 + $0x10] sm:$0xff] %v1517_v43  ;;  %1524 = vst [vmem:[#allocation7 + $0x18] sm:$0xff] %v1518_v44 }
 0x6e1   :  { %1525 = vst [vmem:[#allocation7 + $0x20] sm:$0xff] %v1519_v45  ;;  %1526 = vst.msk [vmem:[#allocation7 + $0x28] sm:$0xff] %vm68_vm1, %v1520_v3 }
 0x6e2   :  { %1603 = shalt.err (!%p1600_p9)
}
 0x6e3   :  { %1536 = dma.vmem_to_hbm [thread:$0]  %s1534_s6, 768, %s2181_s8, [#allocation6]  }
 0x6e4   :  { %1614 = dma.done.wait [#allocation6], 768  }
 0x6e5   :  { %1615 = vsyncadd [#allocation6], 4294966528 }
 0x6e6   :  { %1540 = vsyncpa [#allocation5], 1 }
 0x6e7   :  { %1541 = vsyncpa [#allocation6], 1 }

</bundles_post_ra>
